<compile_context>
chip_gen: v5e
topology: v5e:2x2
jax: 0.10.0
libtpu: 0.0.40
codegen_flags: <defaults>
</compile_context>

<pallas_src>
import functools

import numpy as np
import jax
import jax.numpy as jnp
from jax.experimental import pallas as pl
from jax.experimental.pallas import tpu as pltpu

FFT_LEN = 512            # hard-coded by the forward's constants
HALF = FFT_LEN // 2      # 256
WIN_LEN = 1024           # self.win must be length 1024 (win.expand(1024, frame))
IN_CH = FFT_LEN + 2      # 514 raw channels: real(256) | dc | imag(256) | nyquist


def _default_fuse_window():
    """Fuse the window into the basis on v6e/v7x-class chips (MXU slack),
    keep the split basis on v2-v5 (already MXU/HBM balanced)."""
    try:
        kind = jax.devices()[0].device_kind.lower()
    except Exception:
        return True
    return not any(s in kind for s in ("v2", "v3", "v4", "v5"))


def _build_synthesis_constants(fuse_window=None):
    """Host-side (float64) precompute of the linear operator mapping the RAW
    spectrum channels -> windowed real(FFT(conj-symmetric extension)), with the
    final frequency flip, the imag[255] (raw ch 512) remap and optionally the
    four x256-scaled window slices folded into a single bf16 MXU operand."""
    if fuse_window is None:
        fuse_window = _default_fuse_window()

    N, H = FFT_LEN, HALF
    n = np.arange(N)
    k = np.arange(N)
    cos = np.cos(2.0 * np.pi * np.outer(k, n) / N)
    sin = np.sin(2.0 * np.pi * np.outer(k, n) / N)

    # Symmetric extension: a_ext = Pa @ spec, b_ext = Pb @ spec, spec = [re;im]
    Pa = np.zeros((N, N))
    Pb = np.zeros((N, N))
    for i in range(H):
        Pa[i, i] = 1.0                      # a_ext[n]      =  real[n]
        Pb[i, H + i] = 1.0                  # b_ext[n]      =  imag[n]
    for m in range(1, H):
        Pa[H + m, H - m] = 1.0              # a_ext[256+m]  =  real[256-m]
        Pb[H + m, H + (H - m)] = -1.0       # b_ext[256+m]  = -imag[256-m]

    # real(FFT(a + i b))[k] = sum_n a[n] cos(2*pi*k*n/N) + b[n] sin(2*pi*k*n/N)
    M = cos @ Pa + sin @ Pb                               # [k, spec_channel]

    # Fold the final frequency flip: col j of WA <-> freq 511-j, WB <-> 255-j.
    WA = M[N - 1:H - 1:-1, :].T                           # [512 spec-ch, 256]
    WB = M[H - 1::-1, :].T                                # [512 spec-ch, 256]
    Wfull = np.concatenate([WA, WB], axis=1)              # [512 spec-ch, 512]

    # Remap spec-channel rows onto the KERNEL channel layout (the wrapper
    # builds channels = [raw 0..255 | raw 512 | raw 257..511]):
    #   ch 0..255   -> real[0..255]
    #   ch 256      -> imag[255]   (raw ch 512, folded into the matmul)
    #   ch 257..511 -> imag[0..254]
    W512 = np.zeros((FFT_LEN, FFT_LEN))
    W512[0:H, :] = Wfull[0:H, :]
    W512[H, :] = Wfull[FFT_LEN - 1, :]
    W512[H + 1:FFT_LEN, :] = Wfull[H:FFT_LEN - 1, :]

    # Deterministic synthetic window (the module loads it from a binary file).
    # TODO(synk): the real module reads 'win_fn' floats from disk; we use a
    # deterministic periodic Hann window of length 1024 instead.
    win = 0.5 * (1.0 - np.cos(2.0 * np.pi * np.arange(WIN_LEN) / WIN_LEN))
    j = np.arange(H)
    # x256 output scale folded into the window slices (host-side constant fold).
    win4 = 256.0 * np.stack(
        [win[1023 - j], win[767 - j], win[511 - j], win[255 - j]], axis=0)

    if fuse_window:
        # Fused basis: matmul directly emits a|b|c|d windowed contributions.
        W = np.concatenate(
            [W512[:, :H] * win4[0][None, :],
             W512[:, H:] * win4[1][None, :],
             W512[:, :H] * win4[2][None, :],
             W512[:, H:] * win4[3][None, :]], axis=1)      # [512, 1024]
    else:
        W = W512                                           # [512, 512]

    return (jnp.asarray(W, dtype=jnp.bfloat16),            # MXU operand
            jnp.asarray(win4, dtype=jnp.float32),          # only used unfused
            win.astype(np.float32))


def _sgpi_stft_kernel(fused, *refs):
    # fused=True : refs = spec[1,tile,512]bf16, W[512,1024]bf16, out, carry
    # fused=False: refs = spec[1,tile,512]bf16, W[512,512]bf16, win4[4,256]f32,
    #              out, carry
    # out   : [1, tile, 256] f32
    # carry : [8, 256] f32   overlap-add spill into the next time tile
    if fused:
        spec_ref, w_ref, out_ref, carry_ref = refs
        win_ref = None
    else:
        spec_ref, w_ref, win_ref, out_ref, carry_ref = refs

    j = pl.program_id(1)

    @pl.when(j == 0)
    def _init():
        carry_ref[...] = jnp.zeros_like(carry_ref)

    carry_in = carry_ref[...]                                  # [8, 256]

    x = spec_ref[0]                                            # [tile, 512] bf16
    proj = jnp.dot(x, w_ref[...], preferred_element_type=jnp.float32)

    if fused:
        # Basis already windowed: lane-aligned 256-wide slabs.
        a = proj[:, 0 * HALF:1 * HALF]   # contribution to out[t]
        b = proj[:, 1 * HALF:2 * HALF]   # contribution to out[t+1]
        c = proj[:, 2 * HALF:3 * HALF]   # contribution to out[t+2]
        d = proj[:, 3 * HALF:4 * HALF]   # contribution to out[t+3]
    else:
        pa = proj[:, :HALF]              # ifft[511-j]
        pb = proj[:, HALF:]              # ifft[255-j]
        a = pa * win_ref[0:1, :]
        b = pb * win_ref[1:2, :]
        c = pa * win_ref[2:3, :]
        d = pb * win_ref[3:4, :]

    b1 = pltpu.roll(b, shift=1, axis=0)
    c2 = pltpu.roll(c, shift=2, axis=0)
    d3 = pltpu.roll(d, shift=3, axis=0)

    tile_rows = a.shape[0]

    # Rows >= 8 (in fact >= 3): unmasked within-tile overlap-add.
    if tile_rows > 8:
        out_ref[0, 8:, :] = a[8:, :] + b1[8:, :] + c2[8:, :] + d3[8:, :]

    # First 8 rows: mask the wrapped-around rolled values and add the carry
    # from the previous tile (selects only over [8, 256] — essentially free).
    r8 = jax.lax.broadcasted_iota(jnp.int32, (8, 1), 0)
    out_ref[0, 0:8, :] = (a[0:8, :] + carry_in
                          + jnp.where(r8 >= 1, b1[0:8, :], 0.0)
                          + jnp.where(r8 >= 2, c2[0:8, :], 0.0)
                          + jnp.where(r8 >= 3, d3[0:8, :], 0.0))

    # New carry: exactly the wrapped-around values masked out above; they
    # belong to rows 0..2 of the NEXT tile (reset at each batch's tile 0).
    carry_ref[...] = (jnp.where(r8 < 1, b1[0:8, :], 0.0)
                      + jnp.where(r8 < 2, c2[0:8, :], 0.0)
                      + jnp.where(r8 < 3, d3[0:8, :], 0.0))


def _vmem_limit_bytes(tile, n_cols):
    in_bytes = tile * FFT_LEN * 2          # bf16 spectrum block
    out_bytes = tile * HALF * 4            # f32 output block
    w_bytes = FFT_LEN * n_cols * 2         # bf16 basis
    win_bytes = 4 * HALF * 4
    work_bytes = tile * n_cols * 4 + 4 * tile * HALF * 4   # proj + rolled temps
    est = (2 * (in_bytes + out_bytes + w_bytes + win_bytes)
           + 8 * HALF * 4 + work_bytes + (4 << 20))
    return int(min(max(est, 32 << 20), 48 << 20))


def sgpi_stft_forward(x, w, win4=None, *, tile_t=1024):
    """x: [B, 514, T] float32 (same NCW layout as the torch module input).
    w: basis from _build_synthesis_constants (fused [512,1024] or [512,512])."""
    B, C, T = x.shape
    assert C == IN_CH and T >= 2
    assert tile_t % 8 == 0 and tile_t >= 8

    n_cols = w.shape[1]
    fused = (n_cols == 4 * HALF)
    if not fused:
        assert n_cols == FFT_LEN and win4 is not None

    # Single fused transpose/remap/cast pass producing the kernel layout:
    # channels = [real 0..255 | imag[255] (raw ch 512) | imag 0..254], bf16.
    xr = jnp.swapaxes(x, 1, 2)                                   # [B, T, 514]
    spec_t = jnp.concatenate(
        [xr[..., 0:HALF], xr[..., FFT_LEN:FFT_LEN + 1], xr[..., HALF + 1:FFT_LEN]],
        axis=-1).astype(jnp.bfloat16)                            # [B, T, 512]

    t_in = ((T + 7) // 8) * 8
    if t_in != T:
        spec_t = jnp.pad(spec_t, ((0, 0), (0, t_in - T), (0, 0)))

    T_out = T - 1                         # torch keeps frames 0..T-2
    tile = min(int(tile_t), t_in)
    assert tile % 8 == 0 and tile >= 8
    jt = -(-T_out // tile)                # only tiles that touch valid output

    in_specs = [
        pl.BlockSpec((1, tile, FFT_LEN), lambda b, j: (b, j, 0)),
        pl.BlockSpec((FFT_LEN, n_cols), lambda b, j: (0, 0)),
    ]
    operands = [spec_t, w]
    if not fused:
        in_specs.append(pl.BlockSpec((4, HALF), lambda b, j: (0, 0)))
        operands.append(win4)

    out = pl.pallas_call(
        functools.partial(_sgpi_stft_kernel, fused),
        out_shape=jax.ShapeDtypeStruct((B, T_out, HALF), jnp.float32),
        grid_spec=pltpu.PrefetchScalarGridSpec(
            num_scalar_prefetch=0,
            grid=(B, jt),
            in_specs=in_specs,
            out_specs=pl.BlockSpec((1, tile, HALF), lambda b, j: (b, j, 0)),
            scratch_shapes=[pltpu.VMEM((8, HALF), jnp.float32)],
        ),
        compiler_params=pltpu.CompilerParams(
            dimension_semantics=("parallel", "arbitrary"),
            vmem_limit_bytes=_vmem_limit_bytes(tile, n_cols),
        ),
    )(*operands)

    # torch: synbuf[:, 768:1024, :-4] keeps frames 0..T-2 (flip folded into the
    # basis), permutes to [B, T-1, 256] and flattens.  Contiguous reshape only.
    return out.reshape(B, T_out * HALF)


def _reference_numpy(x, win):
    """Direct float64 numpy transcription of the torch forward."""
    real = x[:, 0:HALF, :]
    imag = x[:, HALF + 1:FFT_LEN + 1, :]
    inp = np.stack([real, imag], 1)                      # [B, 2, 256, T]
    x1 = inp[:, :, 1:, :][:, :, ::-1, :]
    x1 = np.pad(x1, ((0, 0), (0, 0), (1, 0), (0, 0)))
    x1[:, 1, :, :] = x1[:, 1, :, :] * -1
    t_data = np.concatenate([inp, x1], 2)                # [B, 2, 512, T]
    t_data = np.transpose(t_data, (3, 0, 2, 1))          # [T, B, 512, 2]
    cplx = t_data[..., 0] + 1j * t_data[..., 1]
    ifft_data = np.real(np.fft.fft(cplx, axis=-1))       # [T, B, 512]
    ifft_data = np.transpose(ifft_data, (1, 2, 0))       # [B, 512, T]
    tmp = np.concatenate([ifft_data, ifft_data], 1)      # [B, 1024, T]
    tmp = tmp * win[None, :, None] * 256.0
    tmp1 = np.pad(tmp, ((0, 0), (0, 768), (0, 3)))
    tmp2 = np.pad(tmp, ((0, 0), (256, 512), (1, 2)))
    tmp3 = np.pad(tmp, ((0, 0), (512, 256), (2, 1)))
    tmp4 = np.pad(tmp, ((0, 0), (768, 0), (3, 0)))
    synbuf = tmp1 + tmp2 + tmp3 + tmp4
    syn = synbuf[:, 768:1024, :-4][:, ::-1, :]           # [B, 256, T-1]
    B = syn.shape[0]
    return np.transpose(syn, (0, 2, 1)).reshape(B, -1)


if __name__ == "__main__":
    B, T = 2, 40
    key = jax.random.PRNGKey(0)
    x = jax.random.normal(key, (B, IN_CH, T), dtype=jnp.float32)

    ref = None
    # Exercise both the fused-window (v6e/v7x default) and split-window (v5e)
    # paths; tile_t=16 keeps the smoke test tiny while covering multi-tile
    # carry, the ragged last output tile and the ragged last input block
    # (production default is tile_t=1024).
    for fuse in (True, False):
        W, win4, win_np = _build_synthesis_constants(fuse_window=fuse)
        fwd = jax.jit(lambda inp, W=W, win4=win4:
                      sgpi_stft_forward(inp, W, win4, tile_t=16))
        out = jax.block_until_ready(fwd(x))

        if ref is None:
            ref = _reference_numpy(np.asarray(x, dtype=np.float64),
                                   win_np.astype(np.float64))
        assert out.shape == (B, (T - 1) * HALF), out.shape
        scale = np.max(np.abs(ref)) + 1e-6
        max_err = np.max(np.abs(np.asarray(out, dtype=np.float64) - ref))
        # bf16 MXU inputs with f32 accumulation: allow 2% of peak magnitude.
        assert max_err <= 2e-2 * scale, (fuse, max_err, scale)

    print("KERNEL_OK")
</pallas_src>

<mosaic_0001>
module attributes {stable_mosaic.version = 11 : i64} {
  func.func @_sgpi_stft_kernel(%arg0: i32, %arg1: i32, %arg2: memref<1x16x512xbf16, #tpu.memory_space<vmem>>, %arg3: memref<512x1024xbf16, #tpu.memory_space<vmem>>, %arg4: memref<1x16x256xf32, #tpu.memory_space<vmem>>, %arg5: memref<8x256xf32, #tpu.memory_space<vmem>>) attributes {dimension_semantics = [#tpu.dimension_semantics<parallel>, #tpu.dimension_semantics<arbitrary>], iteration_bounds = array<i64: 2, 3>, scalar_prefetch = 0 : i64, scratch_operands = 1 : i64, tpu.core_type = #tpu.core_type<tc>, window_params = [{transform_indices = @transform_0, window_bounds = array<i64: 1, 16, 512>}, {pipeline_mode = #tpu.pipeline_mode<synchronous>, transform_indices = @transform_1, window_bounds = array<i64: 512, 1024>}, {transform_indices = @transform_2, window_bounds = array<i64: 1, 16, 256>}]} {
    %c0_i32 = arith.constant 0 : i32
    %0 = arith.cmpi eq, %arg1, %c0_i32 : i32
    %1 = arith.extui %0 : i1 to i32
    %c0_i32_0 = arith.constant 0 : i32
    %2 = arith.cmpi ne, %1, %c0_i32_0 : i32
    scf.if %2 {
      %cst_26 = arith.constant 0.000000e+00 : f32
      %79 = vector.broadcast %cst_26 : f32 to vector<8x256xf32>
      %c0_27 = arith.constant 0 : index
      %c0_28 = arith.constant 0 : index
      %80 = vector.load %arg5[%c0_27, %c0_28] : memref<8x256xf32, #tpu.memory_space<vmem>>, vector<8x256xf32>
      tpu.vector_store %arg5[%c0_27, %c0_28], %79 {strides = array<i32>} : memref<8x256xf32, #tpu.memory_space<vmem>>, vector<8x256xf32>,
    } else {
    }
    %c0 = arith.constant 0 : index
    %c0_1 = arith.constant 0 : index
    %3 = vector.load %arg5[%c0, %c0_1] : memref<8x256xf32, #tpu.memory_space<vmem>>, vector<8x256xf32>
    %c0_2 = arith.constant 0 : index
    %c0_3 = arith.constant 0 : index
    %c0_4 = arith.constant 0 : index
    %4 = vector.load %arg2[%c0_2, %c0_3, %c0_4] : memref<1x16x512xbf16, #tpu.memory_space<vmem>>, vector<1x16x512xbf16>
    %5 = vector.shape_cast %4 : vector<1x16x512xbf16> to vector<16x512xbf16>
    %c0_5 = arith.constant 0 : index
    %c0_6 = arith.constant 0 : index
    %6 = vector.load %arg3[%c0_5, %c0_6] : memref<512x1024xbf16, #tpu.memory_space<vmem>>, vector<512x1024xbf16>
    %cst = arith.constant dense<0.000000e+00> : vector<16x1024xf32>
    %7 = tpu.matmul %5, %6, %cst {dimension_numbers = #tpu.dot_dimension_numbers<[1], [0], [0], [1], [0, 0, 1, 1], [], []>} : vector<16x512xbf16>, vector<512x1024xbf16>, vector<16x1024xf32> -> vector<16x1024xf32>
    %8 = vector.extract_strided_slice %7 {offsets = [0, 0], sizes = [16, 256], strides = [1, 1]} : vector<16x1024xf32> to vector<16x256xf32>
    %9 = vector.extract_strided_slice %7 {offsets = [0, 256], sizes = [16, 256], strides = [1, 1]} : vector<16x1024xf32> to vector<16x256xf32>
    %10 = vector.extract_strided_slice %7 {offsets = [0, 512], sizes = [16, 256], strides = [1, 1]} : vector<16x1024xf32> to vector<16x256xf32>
    %11 = vector.extract_strided_slice %7 {offsets = [0, 768], sizes = [16, 256], strides = [1, 1]} : vector<16x1024xf32> to vector<16x256xf32>
    %c1_i32 = arith.constant 1 : i32
    %12 = tpu.dynamic_rotate %9 by %c1_i32 dim 0 : vector<16x256xf32>, i32 -> vector<16x256xf32>
    %c2_i32 = arith.constant 2 : i32
    %13 = tpu.dynamic_rotate %10 by %c2_i32 dim 0 : vector<16x256xf32>, i32 -> vector<16x256xf32>
    %c3_i32 = arith.constant 3 : i32
    %14 = tpu.dynamic_rotate %11 by %c3_i32 dim 0 : vector<16x256xf32>, i32 -> vector<16x256xf32>
    %15 = vector.extract_strided_slice %8 {offsets = [8, 0], sizes = [8, 256], strides = [1, 1]} : vector<16x256xf32> to vector<8x256xf32>
    %16 = vector.extract_strided_slice %12 {offsets = [8, 0], sizes = [8, 256], strides = [1, 1]} : vector<16x256xf32> to vector<8x256xf32>
    %17 = arith.addf %15, %16 : vector<8x256xf32>
    %18 = vector.extract_strided_slice %13 {offsets = [8, 0], sizes = [8, 256], strides = [1, 1]} : vector<16x256xf32> to vector<8x256xf32>
    %19 = arith.addf %17, %18 : vector<8x256xf32>
    %20 = vector.extract_strided_slice %14 {offsets = [8, 0], sizes = [8, 256], strides = [1, 1]} : vector<16x256xf32> to vector<8x256xf32>
    %21 = arith.addf %19, %20 : vector<8x256xf32>
    %c0_7 = arith.constant 0 : index
    %c8 = arith.constant 8 : index
    %c0_8 = arith.constant 0 : index
    %22 = vector.load %arg4[%c0_7, %c8, %c0_8] : memref<1x16x256xf32, #tpu.memory_space<vmem>>, vector<1x8x256xf32>
    %23 = vector.shape_cast %22 : vector<1x8x256xf32> to vector<8x256xf32>
    %24 = vector.shape_cast %21 : vector<8x256xf32> to vector<1x8x256xf32>
    tpu.vector_store %arg4[%c0_7, %c8, %c0_8], %24 {strides = array<i32>} : memref<1x16x256xf32, #tpu.memory_space<vmem>>, vector<1x8x256xf32>,
    %25 = tpu.iota {dimensions = array<i32: 0>} : vector<8x1xi32>
    %26 = vector.extract_strided_slice %8 {offsets = [0, 0], sizes = [8, 256], strides = [1, 1]} : vector<16x256xf32> to vector<8x256xf32>
    %27 = arith.addf %26, %3 : vector<8x256xf32>
    %c1_i32_9 = arith.constant 1 : i32
    %28 = vector.broadcast %c1_i32_9 : i32 to vector<8x1xi32>
    %29 = arith.cmpi sge, %25, %28 : vector<8x1xi32>
    %30 = vector.extract_strided_slice %12 {offsets = [0, 0], sizes = [8, 256], strides = [1, 1]} : vector<16x256xf32> to vector<8x256xf32>
    %cst_10 = arith.constant 0.000000e+00 : f32
    %31 = vector.shape_cast %29 : vector<8x1xi1> to vector<8x1xi1>
    %32 = vector.broadcast %31 : vector<8x1xi1> to vector<8x256xi1>
    %33 = vector.broadcast %cst_10 : f32 to vector<8x256xf32>
    %34 = arith.select %32, %30, %33 : vector<8x256xi1>, vector<8x256xf32>
    %35 = arith.addf %27, %34 : vector<8x256xf32>
    %c2_i32_11 = arith.constant 2 : i32
    %36 = vector.broadcast %c2_i32_11 : i32 to vector<8x1xi32>
    %37 = arith.cmpi sge, %25, %36 : vector<8x1xi32>
    %38 = vector.extract_strided_slice %13 {offsets = [0, 0], sizes = [8, 256], strides = [1, 1]} : vector<16x256xf32> to vector<8x256xf32>
    %cst_12 = arith.constant 0.000000e+00 : f32
    %39 = vector.shape_cast %37 : vector<8x1xi1> to vector<8x1xi1>
    %40 = vector.broadcast %39 : vector<8x1xi1> to vector<8x256xi1>
    %41 = vector.broadcast %cst_12 : f32 to vector<8x256xf32>
    %42 = arith.select %40, %38, %41 : vector<8x256xi1>, vector<8x256xf32>
    %43 = arith.addf %35, %42 : vector<8x256xf32>
    %c3_i32_13 = arith.constant 3 : i32
    %44 = vector.broadcast %c3_i32_13 : i32 to vector<8x1xi32>
    %45 = arith.cmpi sge, %25, %44 : vector<8x1xi32>
    %46 = vector.extract_strided_slice %14 {offsets = [0, 0], sizes = [8, 256], strides = [1, 1]} : vector<16x256xf32> to vector<8x256xf32>
    %cst_14 = arith.constant 0.000000e+00 : f32
    %47 = vector.shape_cast %45 : vector<8x1xi1> to vector<8x1xi1>
    %48 = vector.broadcast %47 : vector<8x1xi1> to vector<8x256xi1>
    %49 = vector.broadcast %cst_14 : f32 to vector<8x256xf32>
    %50 = arith.select %48, %46, %49 : vector<8x256xi1>, vector<8x256xf32>
    %51 = arith.addf %43, %50 : vector<8x256xf32>
    %c0_15 = arith.constant 0 : index
    %c0_16 = arith.constant 0 : index
    %c0_17 = arith.constant 0 : index
    %52 = vector.load %arg4[%c0_15, %c0_16, %c0_17] : memref<1x16x256xf32, #tpu.memory_space<vmem>>, vector<1x8x256xf32>
    %53 = vector.shape_cast %52 : vector<1x8x256xf32> to vector<8x256xf32>
    %54 = vector.shape_cast %51 : vector<8x256xf32> to vector<1x8x256xf32>
    tpu.vector_store %arg4[%c0_15, %c0_16, %c0_17], %54 {strides = array<i32>} : memref<1x16x256xf32, #tpu.memory_space<vmem>>, vector<1x8x256xf32>,
    %c1_i32_18 = arith.constant 1 : i32
    %55 = vector.broadcast %c1_i32_18 : i32 to vector<8x1xi32>
    %56 = arith.cmpi slt, %25, %55 : vector<8x1xi32>
    %57 = vector.extract_strided_slice %12 {offsets = [0, 0], sizes = [8, 256], strides = [1, 1]} : vector<16x256xf32> to vector<8x256xf32>
    %cst_19 = arith.constant 0.000000e+00 : f32
    %58 = vector.shape_cast %56 : vector<8x1xi1> to vector<8x1xi1>
    %59 = vector.broadcast %58 : vector<8x1xi1> to vector<8x256xi1>
    %60 = vector.broadcast %cst_19 : f32 to vector<8x256xf32>
    %61 = arith.select %59, %57, %60 : vector<8x256xi1>, vector<8x256xf32>
    %c2_i32_20 = arith.constant 2 : i32
    %62 = vector.broadcast %c2_i32_20 : i32 to vector<8x1xi32>
    %63 = arith.cmpi slt, %25, %62 : vector<8x1xi32>
    %64 = vector.extract_strided_slice %13 {offsets = [0, 0], sizes = [8, 256], strides = [1, 1]} : vector<16x256xf32> to vector<8x256xf32>
    %cst_21 = arith.constant 0.000000e+00 : f32
    %65 = vector.shape_cast %63 : vector<8x1xi1> to vector<8x1xi1>
    %66 = vector.broadcast %65 : vector<8x1xi1> to vector<8x256xi1>
    %67 = vector.broadcast %cst_21 : f32 to vector<8x256xf32>
    %68 = arith.select %66, %64, %67 : vector<8x256xi1>, vector<8x256xf32>
    %69 = arith.addf %61, %68 : vector<8x256xf32>
    %c3_i32_22 = arith.constant 3 : i32
    %70 = vector.broadcast %c3_i32_22 : i32 to vector<8x1xi32>
    %71 = arith.cmpi slt, %25, %70 : vector<8x1xi32>
    %72 = vector.extract_strided_slice %14 {offsets = [0, 0], sizes = [8, 256], strides = [1, 1]} : vector<16x256xf32> to vector<8x256xf32>
    %cst_23 = arith.constant 0.000000e+00 : f32
    %73 = vector.shape_cast %71 : vector<8x1xi1> to vector<8x1xi1>
    %74 = vector.broadcast %73 : vector<8x1xi1> to vector<8x256xi1>
    %75 = vector.broadcast %cst_23 : f32 to vector<8x256xf32>
    %76 = arith.select %74, %72, %75 : vector<8x256xi1>, vector<8x256xf32>
    %77 = arith.addf %69, %76 : vector<8x256xf32>
    %c0_24 = arith.constant 0 : index
    %c0_25 = arith.constant 0 : index
    %78 = vector.load %arg5[%c0_24, %c0_25] : memref<8x256xf32, #tpu.memory_space<vmem>>, vector<8x256xf32>
    tpu.vector_store %arg5[%c0_24, %c0_25], %77 {strides = array<i32>} : memref<8x256xf32, #tpu.memory_space<vmem>>, vector<8x256xf32>,
    return
  }
  func.func @transform_0(%arg0: i32, %arg1: i32) -> (i32, i32, i32) {
    %c0_i32 = arith.constant 0 : i32
    %c0_i32_0 = arith.constant 0 : i32
    return %arg0, %arg1, %c0_i32 : i32, i32, i32
  }
  func.func @transform_1(%arg0: i32, %arg1: i32) -> (i32, i32) {
    %c0_i32 = arith.constant 0 : i32
    %c0_i32_0 = arith.constant 0 : i32
    %c0_i32_1 = arith.constant 0 : i32
    return %c0_i32, %c0_i32_0 : i32, i32
  }
  func.func @transform_2(%arg0: i32, %arg1: i32) -> (i32, i32, i32) {
    %c0_i32 = arith.constant 0 : i32
    %c0_i32_0 = arith.constant 0 : i32
    return %arg0, %arg1, %c0_i32 : i32, i32, i32
  }
}

</mosaic_0001>

<bundles_post_ra>
// kernel: _lambda_.1
= control target key start
LH: loop header
LB: loop body
LE: loop exit
PB: predicated region body
PF: predicated region fallthrough
CT: control target
= control target key end

     0   :  { %7 = vsyncpa [#allocation4], 0  ;;  %s4160_s9 = smov 0   ;;  %s4162_s10 = smov 0   ;;  %s4468_s0 = inlined_call_operand.vmem [shape: bf16[2,40,512], index: 0, kind: input, shape index: {}]   ;;  %s4469_s1 = inlined_call_operand.hbm [shape: bf16[512,1024], index: 1, kind: input, shape index: {}]   ;;  %s4470_s2 = inlined_call_operand.vmem [shape: f32[2,39,256], index: 2, kind: output, shape index: {}]  }
   0x1   :  { %s4164_s11 = smov 0   ;;  %s4166_s12 = smov 0  }
   0x2   :  { %s4168_s13 = smov 0   ;;  %s4170_s14 = smov 0  }
   0x3   :  { %s4172_s15 = smov 0  }
   0x4 LB: > { %s2516_s16 = sadd.s32 4294967295, %s4107_s15   ;;  %s22_s17 = sadd.s32 1, %s4099_s13  ;;  %s4107_s15 = sphi %s4172_s15, %s13_s15   ;;  %s4103_s14 = sphi %s4170_s14, %s4482_s14   ;;  %s4099_s13 = sphi %s4168_s13, %s4481_s13   ;;  %s4095_s12 = sphi %s4166_s12, %s4480_s12   ;;  %s4091_s11 = sphi %s4164_s11, %s4479_s11   ;;  %s4087_s10 = sphi %s4162_s10, %s4478_s10   ;;  %s4083_s9 = sphi %s4160_s9, %s4477_s9  }
   0x5   : > { %p23_p0 = scmp.ge.s32.totalorder %s22_s17, 3  ;;  %s25_s18 = sadd.s32 1, %s4103_s14 }
   0x6   : > { %s83_s19 = sadd.s32 1, %s4087_s10  ;;  %p93_p1 = scmp.ne.s32.totalorder %s4087_s10, %s4083_s9 }
   0x7   : > { %s4484_s17 = smov (%p23_p0, %s22_s17), 0  ;;  %s4486_s18 = smov (!%p23_p0, %s25_s18), %s4103_s14 }
   0x8   : > { %s79_s20 = ssub.s32 %s4099_s13, %s4484_s17  ;;  %p94_p2 = scmp.eq.s32.totalorder %s2516_s16, 5 }
   0x9   : > { %p27_p3 = scmp.ge.s32.totalorder %s4486_s18, 2  ;;  %p2518_p4 = scmp.ge.s32.totalorder %s4107_s15, 1 }
   0xa   : > { %p4207_p5 = por %p94_p2, %p93_p1  ;;  %p107_p6 = scmp.lt.s32.totalorder %s4107_s15, 7 }
   0xb   : > { %s4488_s18 = smov (%p27_p3, %s4486_s18), 0  ;;  %p4220_p8 = scmp.eq.s32.totalorder %s2516_s16, 0 }
   0xc   : > { %p4214_p7 = pnand %p2518_p4, %p107_p6  ;;  %s78_s23 = ssub.s32 %s4103_s14, %s4488_s18 }
   0xd   : > { %s80_s25 = sor.u32 %s79_s20, %s78_s23  ;;  %s118_s28 = sshll.u32 %s4469_s1, 4  ;;  %s119_s28 = int_to_ptr.hbm [resolvable:$true] %s118_s28 }
   0xe   : > { %p3857_p9 = pneg %p4214_p7  ;;  %p81_p10 = scmp.eq.s32.totalorder %s80_s25, 0 }
   0xf   : > { %s4141_s30 = smov [#allocation3]   ;;  %s4142_s4 = smov 512  }
  0x10   : > { %s4230_s29 = scalar_select %p81_p10, %s4087_s10, %s83_s19  }
  0x11   : > { %s120_s3 = sshll.u32 %s4141_s30, 4  ;;  %p3858_p11 = pnand %p4220_p8, %p3857_p9  ;;  %s121_s3 = int_to_ptr.vmem [resolvable:$true] %s120_s3 }
  0x12   : > { %s4143_s5 = smov 32   ;;  %160 = sbr.rel (%p4214_p7) target bundleno = 522 (0x20a), region = 28 }
  0x13   : > { %3860 = dma.hbm_to_vmem [thread:$0]  (!%p3858_p11), %s119_s28, 32768, %s121_s3, [#allocation4], %s4142_s4, %s4142_s4, %s4143_s5  }
  0x17   : > { %4078 = dma.done.wait (%p4220_p8), [#allocation4], 32768  }
  0x18   : > { %4080 = vsyncadd (%p4220_p8), [#allocation4], 4294934528  ;;  %s189_s6 = sand.u32 1, %s4083_s9   ;;  %s4242_s7 = sshll.u32 %s4091_s11, 1 }
  0x19   : > { %s2523_s8 = sshll.u32 %s189_s6, 5  ;;  %p198_p12 = scmp.lt.s32.totalorder %s4095_s12, 1 }
  0x1a   : > { %p200_p13 = scmp.lt.s32.totalorder %s4242_s7, 4  ;;  %s4253_s28 = scalar_lea.vmem [#allocation5], %s2523_s8  }
  0x1b   : > { %s199_s16 = scalar_select %p198_p12, %s4095_s12, 1 }
  0x1c   : > { %s201_s19 = scalar_select %p200_p13, %s4242_s7, 4 }
  0x1d   : > { %s3851_s20 = smul.u32 20, %s199_s16  ;;  %p2527_p0 = scmp.ne.s32.totalorder %s4091_s11, 0 }
  0x1e   : > { %s2525_s22 = sshll.u32 %s201_s19, 2 }
  0x1f   : > { %s204_s23 = sadd.s32 %s3851_s20, %s2525_s22  ;;  %222 = sbr.rel (%p2527_p0) target bundleno = 39 (0x27), region = 36 }
  0x20   : > { %s2526_s25 = sshll.u32 %s204_s23, 2 }
  0x21   : > { %s4251_s27 = scalar_lea.vmem %s4468_s0, %s2526_s25 }
  0x24   : > { %v4144_v0 = vmov 0.0  }
  0x25   : > { %223 = vst [vmem:[#allocation2] sm:$0xff] %v4144_v0 }
  0x26   : > { %224 = vst [vmem:[#allocation2 + $0x8] sm:$0xff] %v4144_v0 }
  0x27 PF: > { %v2770_v1 = vld [vmem:[#allocation3 + $0x1c0] sm:$0xf]  ;;  %s2323_s9 = ssub.s32 (%p4207_p5), 5, %s4242_s7  ;;  %s3848_s30 = sshll.u32 (%p4207_p5), %s4091_s11, 2 }
  0x28   : > { %v3651_v2 = vld [vmem:[#allocation3 + $0x1dc] sm:$0xf0]  ;;  %p2324_p1 = scmp.lt.s32.totalorder (%p4207_p5), %s2323_s9, 2  ;;  %s3852_s3 = smul.u32 (%p4207_p5), 10, %s4095_s12 }
  0x29   : > { %v3026_v3 = vld [vmem:[#allocation3 + $0x3c0] sm:$0xf]  ;;  %v2771_v4 = vor.u32 %v3651_v2, %v2770_v1 }
  0x2a   : > { %v3715_v5 = vld [vmem:[#allocation3 + $0x3dc] sm:$0xf0]  ;;  %s2331_s4 = sadd.s32 (%p4207_p5), %s3852_s3, %s3848_s30 }
  0x2b   : > { %v3282_v6 = vld [vmem:[#allocation3 + $0x5c0] sm:$0xf]  ;;  %v3027_v8 = vor.u32 %v3715_v5, %v3026_v3  ;;  %1787 = vmatpush.bf16.msra.mxu0 %v2771_v4  ;;  %s3574_s6 = sshll.u32 (%p4207_p5), %s2331_s4, 3 }
  0x2c   : > { %v3779_v7 = vld [vmem:[#allocation3 + $0x5dc] sm:$0xf0]  ;;  %s4407_s19 = scalar_lea.vmem (%p4207_p5), %s4470_s2, %s3574_s6  }
  0x2d   : > { %v3283_v9 = vor.u32 %v3779_v7, %v3282_v6  ;;  %v3538_v10 = vld [vmem:[#allocation3 + $0x7c0] sm:$0xf]  ;;  %1801 = vmatpush.bf16.msra.mxu1 %v3027_v8 }
  0x2e   : > { %v3843_v11 = vld [vmem:[#allocation3 + $0x7dc] sm:$0xf0] }
  0x2f   : > { %v2738_v12 = vld [vmem:[#allocation3 + $0x180] sm:$0xf]  ;;  %v3539_v13 = vor.u32 %v3843_v11, %v3538_v10  ;;  %1815 = vmatpush.bf16.msra.mxu2 %v3283_v9 }
  0x30   : > { %v3643_v14 = vld [vmem:[#allocation3 + $0x19c] sm:$0xf0] }
  0x31   : > { %v2994_v15 = vld [vmem:[#allocation3 + $0x380] sm:$0xf]  ;;  %v2739_v17 = vor.u32 %v3643_v14, %v2738_v12  ;;  %1829 = vmatpush.bf16.msra.mxu3 %v3539_v13 }
  0x32   : > { %v3707_v16 = vld [vmem:[#allocation3 + $0x39c] sm:$0xf0] }
  0x33   : > { %v2995_v18 = vor.u32 %v3707_v16, %v2994_v15  ;;  %v3250_v19 = vld [vmem:[#allocation3 + $0x580] sm:$0xf]  ;;  %1788 = vmatpush.bf16.msra.mxu0 %v2739_v17 }
  0x34   : > { %v3771_v20 = vld [vmem:[#allocation3 + $0x59c] sm:$0xf0] }
  0x35   : > { %v3506_v21 = vld [vmem:[#allocation3 + $0x780] sm:$0xf]  ;;  %v3251_v22 = vor.u32 %v3771_v20, %v3250_v19  ;;  %1802 = vmatpush.bf16.msra.mxu1 %v2995_v18 }
  0x36   : > { %v3835_v23 = vld [vmem:[#allocation3 + $0x79c] sm:$0xf0] }
  0x37   : > { %v2706_v24 = vld [vmem:[#allocation3 + $0x140] sm:$0xf]  ;;  %v3507_v26 = vor.u32 %v3835_v23, %v3506_v21  ;;  %1816 = vmatpush.bf16.msra.mxu2 %v3251_v22 }
  0x38   : > { %v3635_v25 = vld [vmem:[#allocation3 + $0x15c] sm:$0xf0] }
  0x39   : > { %v2962_v27 = vld [vmem:[#allocation3 + $0x340] sm:$0xf]  ;;  %v2707_v30 = vor.u32 %v3635_v25, %v2706_v24  ;;  %1830 = vmatpush.bf16.msra.mxu3 %v3507_v26 }
  0x3a   : > { %v3699_v28 = vld [vmem:[#allocation3 + $0x35c] sm:$0xf0] }
  0x3b   : > { %v3218_v29 = vld [vmem:[#allocation3 + $0x540] sm:$0xf]  ;;  %v2963_v34 = vor.u32 %v3699_v28, %v2962_v27  ;;  %1789 = vmatpush.bf16.msra.mxu0 %v2707_v30  ;;  %v2772_v30 = vld [vmem:[#allocation3 + $0x1e0] sm:$0xf0] }
  0x3c   : > { %v3763_v31 = vld [vmem:[#allocation3 + $0x55c] sm:$0xf0] }
  0x3d   : > { %v3474_v32 = vld [vmem:[#allocation3 + $0x740] sm:$0xf]  ;;  %v3219_v35 = vor.u32 %v3763_v31, %v3218_v29  ;;  %1803 = vmatpush.bf16.msra.mxu1 %v2963_v34  ;;  %v3647_v29 = vld [vmem:[#allocation3 + $0x1c4] sm:$0xf] }
  0x3e   : > { %v3827_v33 = vld [vmem:[#allocation3 + $0x75c] sm:$0xf0]  ;;  %v3711_v31 = vld [vmem:[#allocation3 + $0x3c4] sm:$0xf] }
  0x3f   : > { %v2674_v36 = vld [vmem:[#allocation3 + $0x100] sm:$0xf]  ;;  %v3475_v39 = vor.u32 %v3827_v33, %v3474_v32  ;;  %1817 = vmatpush.bf16.msra.mxu2 %v3219_v35  ;;  %v3028_v33 = vld [vmem:[#allocation3 + $0x3e0] sm:$0xf0] }
  0x40   : > { %v3627_v37 = vld [vmem:[#allocation3 + $0x11c] sm:$0xf0]  ;;  %v3775_v34 = vld [vmem:[#allocation3 + $0x5c4] sm:$0xf] }
  0x41   : > { %v2930_v38 = vld [vmem:[#allocation3 + $0x300] sm:$0xf]  ;;  %v2675_v45 = vor.u32 %v3627_v37, %v2674_v36  ;;  %1831 = vmatpush.bf16.msra.mxu3 %v3475_v39  ;;  %v3284_v35 = vld [vmem:[#allocation3 + $0x5e0] sm:$0xf0] }
  0x42   : > { %v3691_v40 = vld [vmem:[#allocation3 + $0x31c] sm:$0xf0]  ;;  %v3540_v39 = vld [vmem:[#allocation3 + $0x7e0] sm:$0xf0] }
  0x43   : > { %v3186_v41 = vld [vmem:[#allocation3 + $0x500] sm:$0xf]  ;;  %v2931_v46 = vor.u32 %v3691_v40, %v2930_v38  ;;  %1790 = vmatpush.bf16.msra.mxu0 %v2675_v45  ;;  %v3839_v38 = vld [vmem:[#allocation3 + $0x7c4] sm:$0xf] }
  0x44   : > { %v3755_v42 = vld [vmem:[#allocation3 + $0x51c] sm:$0xf0]  ;;  %v2740_v45 = vld [vmem:[#allocation3 + $0x1a0] sm:$0xf0] }
  0x45   : > { %v3442_v43 = vld [vmem:[#allocation3 + $0x700] sm:$0xf]  ;;  %v3187_v47 = vor.u32 %v3755_v42, %v3186_v41  ;;  %1804 = vmatpush.bf16.msra.mxu1 %v2931_v46  ;;  %v2775_v41 = vor.u32 %v3647_v29, %v2772_v30  ;;  %v3031_v42 = vor.u32 %v3711_v31, %v3028_v33  ;;  %v3703_v46 = vld [vmem:[#allocation3 + $0x384] sm:$0xf] }
  0x46   : > { %v3819_v44 = vld [vmem:[#allocation3 + $0x71c] sm:$0xf0]  ;;  %v2532_v29 = vld [vmem:[%s4251_s27 + $0x10] sm:$0xf0] }
  0x47   : > { %v2642_v48 = vld [vmem:[#allocation3 + $0xc0] sm:$0xf]  ;;  %v3443_v51 = vor.u32 %v3819_v44, %v3442_v43  ;;  %1818 = vmatpush.bf16.msra.mxu2 %v3187_v47  ;;  %v3287_v43 = vor.u32 %v3775_v34, %v3284_v35  ;;  %v3639_v44 = vld [vmem:[#allocation3 + $0x184] sm:$0xf]  ;;  %v3543_v47 = vor.u32 %v3839_v38, %v3540_v39 }
  0x48   : > { %v3619_v49 = vld [vmem:[#allocation3 + $0xdc] sm:$0xf0]  ;;  %v2900_v31 = vld [vmem:[#allocation3 + $0x2e0] sm:$0xf0] }
  0x49   : > { %v2898_v50 = vld [vmem:[#allocation3 + $0x2c0] sm:$0xf]  ;;  %v2643_v57 = vor.u32 %v3619_v49, %v2642_v48  ;;  %1832 = vmatpush.bf16.msra.mxu3 %v3443_v51  ;;  %v2996_v48 = vld [vmem:[#allocation3 + $0x3a0] sm:$0xf0] }
  0x4a   : > { %v3683_v52 = vld [vmem:[#allocation3 + $0x2dc] sm:$0xf0]  ;;  %v3767_v49 = vld [vmem:[#allocation3 + $0x584] sm:$0xf] }
  0x4b   : > { %v3154_v53 = vld [vmem:[#allocation3 + $0x4c0] sm:$0xf]  ;;  %v2899_v58 = vor.u32 %v3683_v52, %v2898_v50  ;;  %1791 = vmatpush.bf16.msra.mxu0 %v2643_v57  ;;  %v3252_v50 = vld [vmem:[#allocation3 + $0x5a0] sm:$0xf0] }
  0x4c   : > { %v3747_v54 = vld [vmem:[#allocation3 + $0x4dc] sm:$0xf0]  ;;  %v3831_v51 = vld [vmem:[#allocation3 + $0x784] sm:$0xf] }
  0x4d   : > { %v3410_v55 = vld [vmem:[#allocation3 + $0x6c0] sm:$0xf]  ;;  %v3155_v59 = vor.u32 %v3747_v54, %v3154_v53  ;;  %1805 = vmatpush.bf16.msra.mxu1 %v2899_v58  ;;  %v3508_v52 = vld [vmem:[#allocation3 + $0x7a0] sm:$0xf0]  ;;  %v2743_v53 = vor.u32 %v3639_v44, %v2740_v45  ;;  %v2999_v54 = vor.u32 %v3703_v46, %v2996_v48 }
  0x4e   : > { %v3811_v56 = vld [vmem:[#allocation3 + $0x6dc] sm:$0xf0]  ;;  %v2708_v57 = vld [vmem:[#allocation3 + $0x160] sm:$0xf0] }
  0x4f   : > { %v2610_v60 = vld [vmem:[#allocation3 + $0x80] sm:$0xf]  ;;  %v3411_v63 = vor.u32 %v3811_v56, %v3410_v55  ;;  %1819 = vmatpush.bf16.msra.mxu2 %v3155_v59  ;;  %v3255_v55 = vor.u32 %v3767_v49, %v3252_v50  ;;  %v3631_v56 = vld [vmem:[#allocation3 + $0x144] sm:$0xf]  ;;  %v3511_v59 = vor.u32 %v3831_v51, %v3508_v52 }
  0x50   : > { %v3611_v61 = vld [vmem:[#allocation3 + $0x9c] sm:$0xf0]  ;;  %v3695_v58 = vld [vmem:[#allocation3 + $0x344] sm:$0xf] }
  0x51   : > { %v2866_v62 = vld [vmem:[#allocation3 + $0x280] sm:$0xf]  ;;  %v2611_v5 = vor.u32 %v3611_v61, %v2610_v60  ;;  %1833 = vmatpush.bf16.msra.mxu3 %v3411_v63  ;;  %v2964_v60 = vld [vmem:[#allocation3 + $0x360] sm:$0xf0] }
  0x52   : > { %v3675_v0 = vld [vmem:[#allocation3 + $0x29c] sm:$0xf0]  ;;  %v3759_v61 = vld [vmem:[#allocation3 + $0x544] sm:$0xf] }
  0x53   : > { %v3122_v1 = vld [vmem:[#allocation3 + $0x480] sm:$0xf]  ;;  %v2867_v6 = vor.u32 %v3675_v0, %v2866_v62  ;;  %1792 = vmatpush.bf16.msra.mxu0 %v2611_v5  ;;  %v3220_v62 = vld [vmem:[#allocation3 + $0x560] sm:$0xf0]  ;;  %v3590_v5 = vld [vmem:[%s4251_s27 + $0x14] sm:$0xf0] }
  0x54   : > { %v3739_v2 = vld [vmem:[#allocation3 + $0x49c] sm:$0xf0]  ;;  %v3823_v63 = vld [vmem:[#allocation3 + $0x744] sm:$0xf] }
  0x55   : > { %v3378_v3 = vld [vmem:[#allocation3 + $0x680] sm:$0xf]  ;;  %v3123_v7 = vor.u32 %v3739_v2, %v3122_v1  ;;  %1806 = vmatpush.bf16.msra.mxu1 %v2867_v6  ;;  %v3476_v0 = vld [vmem:[#allocation3 + $0x760] sm:$0xf0]  ;;  %v2711_v2 = vor.u32 %v3631_v56, %v2708_v57  ;;  %v2967_v6 = vor.u32 %v3695_v58, %v2964_v60 }
  0x56   : > { %v3803_v4 = vld [vmem:[#allocation3 + $0x69c] sm:$0xf0]  ;;  %v3623_v1 = vld [vmem:[#allocation3 + $0x104] sm:$0xf] }
  0x57   : > { %v2578_v8 = vld [vmem:[#allocation3 + $0x40] sm:$0xf]  ;;  %v3379_v11 = vor.u32 %v3803_v4, %v3378_v3  ;;  %1820 = vmatpush.bf16.msra.mxu2 %v3123_v7  ;;  %v2676_v3 = vld [vmem:[#allocation3 + $0x120] sm:$0xf0]  ;;  %v2538_v4 = vld [vmem:[%s4251_s27 + $0x8] sm:$0xf]  ;;  %v3223_v7 = vor.u32 %v3759_v61, %v3220_v62 }
  0x58   : > { %v3603_v9 = vld [vmem:[#allocation3 + $0x5c] sm:$0xf0]  ;;  %v3156_v33 = vld [vmem:[#allocation3 + $0x4e0] sm:$0xf0] }
  0x59   : > { %v2834_v10 = vld [vmem:[#allocation3 + $0x240] sm:$0xf]  ;;  %v2579_v17 = vor.u32 %v3603_v9, %v2578_v8  ;;  %1834 = vmatpush.bf16.msra.mxu3 %v3379_v11  ;;  %v3687_v8 = vld [vmem:[#allocation3 + $0x304] sm:$0xf]  ;;  %v4258_v9 = vor.u32 %v3590_v5, %v2538_v4  ;;  %v2540_v11 = vld [vmem:[%s4251_s27 + $0x18] sm:$0xf0] }
  0x5a   : > { %v3667_v12 = vld [vmem:[#allocation3 + $0x25c] sm:$0xf0]  ;;  %v3807_v35 = vld [vmem:[#allocation3 + $0x6c4] sm:$0xf] }
  0x5b   : > { %v3090_v13 = vld [vmem:[#allocation3 + $0x440] sm:$0xf]  ;;  %v2835_v20 = vor.u32 %v3667_v12, %v2834_v10  ;;  %1793 = vmatpush.bf16.msra.mxu0 %v2579_v17  ;;  %v3588_v10 = vld [vmem:[%s4251_s27 + $0xc] sm:$0xf]  ;;  %v3479_v12 = vor.u32 %v3823_v63, %v3476_v0  ;;  %v3815_v17 = vld [vmem:[#allocation3 + $0x704] sm:$0xf] }
  0x5c   : > { %v3731_v14 = vld [vmem:[#allocation3 + $0x45c] sm:$0xf0]  ;;  %v2868_v44 = vld [vmem:[#allocation3 + $0x2a0] sm:$0xf0] }
  0x5d   : > { %v3346_v15 = vld [vmem:[#allocation3 + $0x640] sm:$0xf]  ;;  %v3091_v21 = vor.u32 %v3731_v14, %v3090_v13  ;;  %1807 = vmatpush.bf16.msra.mxu1 %v2835_v20  ;;  %v2932_v13 = vld [vmem:[#allocation3 + $0x320] sm:$0xf0]  ;;  %v2679_v20 = vor.u32 %v3623_v1, %v2676_v3 }
  0x5e   : > { %v3795_v16 = vld [vmem:[#allocation3 + $0x65c] sm:$0xf0]  ;;  %v3751_v14 = vld [vmem:[#allocation3 + $0x504] sm:$0xf] }
  0x5f   : > { %v2546_v18 = vld [vmem:[#allocation3] sm:$0xf]  ;;  %v3347_v25 = vor.u32 %v3795_v16, %v3346_v15  ;;  %1821 = vmatpush.bf16.msra.mxu2 %v3091_v21  ;;  %v3188_v15 = vld [vmem:[#allocation3 + $0x520] sm:$0xf0]  ;;  %v4262_v16 = vor.u32 %v3588_v10, %v2540_v11  ;;  %v2778_v10 = vld [vmem:[#allocation3 + $0x1c8] sm:$0xf] }
  0x60   : > { %v3595_v19 = vld [vmem:[#allocation3 + $0x1c] sm:$0xf0]  ;;  %v2644_v21 = vld [vmem:[#allocation3 + $0xe0] sm:$0xf0]  ;;  %v3652_v11 = vld [vmem:[#allocation3 + $0x1e4] sm:$0xf0] }
  0x61   : > { %v2802_v22 = vld [vmem:[#allocation3 + $0x200] sm:$0xf]  ;;  %v2547_v32 = vor.u32 %v3595_v19, %v2546_v18  ;;  %1835 = vmatpush.bf16.msra.mxu3 %v3347_v25  ;;  %v3444_v18 = vld [vmem:[#allocation3 + $0x720] sm:$0xf0]  ;;  %v3191_v25 = vor.u32 %v3751_v14, %v3188_v15  ;;  %v3716_v14 = vld [vmem:[#allocation3 + $0x3e4] sm:$0xf0] }
  0x62   : > { %v3659_v23 = vld [vmem:[#allocation3 + $0x21c] sm:$0xf0]  ;;  %v3615_v19 = vld [vmem:[#allocation3 + $0xc4] sm:$0xf]  ;;  %v3447_v30 = vor.u32 %v3815_v17, %v3444_v18  ;;  %v3290_v15 = vld [vmem:[#allocation3 + $0x5c8] sm:$0xf] }
  0x63   : > { %v3058_v24 = vld [vmem:[#allocation3 + $0x400] sm:$0xf]  ;;  %v2803_v36 = vor.u32 %v3659_v23, %v2802_v22  ;;  %1794 = vmatpush.bf16.msra.mxu0 %v2547_v32  ;;  %v2530_v22 = vld [vmem:[%s4251_s27] sm:$0xf]  ;;  %v3743_v32 = vld [vmem:[#allocation3 + $0x4c4] sm:$0xf] }
  0x64   : > { %v3723_v26 = vld [vmem:[#allocation3 + $0x41c] sm:$0xf0]  ;;  %v3159_v39 = vor.u32 %v3743_v32, %v3156_v33  ;;  %v3735_v45 = vld [vmem:[#allocation3 + $0x484] sm:$0xf]  ;;  %v3780_v17 = vld [vmem:[#allocation3 + $0x5e4] sm:$0xf0] }
  0x65   : > { %v3314_v27 = vld [vmem:[#allocation3 + $0x600] sm:$0xf]  ;;  %v3059_v37 = vor.u32 %v3723_v26, %v3058_v24  ;;  %1808 = vmatpush.bf16.msra.mxu1 %v2803_v36  ;;  %v2935_v24 = vor.u32 %v3687_v8, %v2932_v13  ;;  %v3679_v26 = vld [vmem:[#allocation3 + $0x2c4] sm:$0xf]  ;;  %v3258_v32 = vld [vmem:[#allocation3 + $0x588] sm:$0xf] }
  0x66   : > { %v3787_v28 = vld [vmem:[#allocation3 + $0x61c] sm:$0xf0]  ;;  %v3412_v36 = vld [vmem:[#allocation3 + $0x6e0] sm:$0xf0]  ;;  %v2903_v38 = vor.u32 %v3679_v26, %v2900_v31  ;;  %v2746_v26 = vld [vmem:[#allocation3 + $0x188] sm:$0xf] }
  0x67   : > { %v3315_v40 = vor.u32 %v3787_v28, %v3314_v27  ;;  %1822 = vmatpush.bf16.msra.mxu2 %v3059_v37  ;;  %1843 = vmatpush.bf16.msrb.mxu0 %v2775_v41  ;;  %v3589_v23 = vld [vmem:[%s4251_s27 + $0xc] sm:$0xf0]  ;;  %v3587_v28 = vld [vmem:[%s4251_s27 + $0x4] sm:$0xf]  ;;  %v2647_v37 = vor.u32 %v3615_v19, %v2644_v21  ;;  %v2612_v41 = vld [vmem:[#allocation3 + $0xa0] sm:$0xf0] }
  0x68   : > { %v4268_v27 = vor.u32 %v3589_v23, %v2530_v22  ;;  %v4272_v34 = vor.u32 %v3587_v28, %v2532_v29  ;;  %v3124_v46 = vld [vmem:[#allocation3 + $0x4a0] sm:$0xf0]  ;;  %v3844_v21 = vld [vmem:[#allocation3 + $0x7e4] sm:$0xf0]  ;;  %v2779_v23 = vor.u32 %v3652_v11, %v2778_v10 }
  0x69   : > { %1836 = vmatpush.bf16.msra.mxu3 %v3315_v40  ;;  %1857 = vmatpush.bf16.msrb.mxu1 %v3031_v42  ;;  %v3607_v40 = vld [vmem:[#allocation3 + $0x84] sm:$0xf]  ;;  %v3127_v51 = vor.u32 %v3735_v45, %v3124_v46  ;;  %v3644_v28 = vld [vmem:[#allocation3 + $0x1a4] sm:$0xf0] }
  0x6a   : > { %1823 = vmatmul.bf16.vlgmr.msra.gmra.mxu2 %v4258_v9  ;;  %1795 = vmatmul.bf16.vlgmr.msra.gmra.mxu0 %v4268_v27  ;;  %v3671_v42 = vld [vmem:[#allocation3 + $0x284] sm:$0xf]  ;;  %v2615_v49 = vor.u32 %v3607_v40, %v2612_v41  ;;  %v3002_v29 = vld [vmem:[#allocation3 + $0x388] sm:$0xf] }
  0x6b   : > { %1871 = vmatpush.bf16.msrb.mxu2 %v3287_v43  ;;  %1844 = vmatpush.bf16.msrb.mxu0 %v2743_v53  ;;  %v3415_v43 = vor.u32 %v3807_v35, %v3412_v36  ;;  %v3380_v48 = vld [vmem:[#allocation3 + $0x6a0] sm:$0xf0]  ;;  %v2871_v50 = vor.u32 %v3671_v42, %v2868_v44  ;;  %v3708_v31 = vld [vmem:[#allocation3 + $0x3a4] sm:$0xf0] }
  0x6c   : > { %1837 = vmatmul.bf16.vlgmr.msra.gmra.mxu3 %v4262_v16  ;;  %1809 = vmatmul.bf16.vlgmr.msra.gmra.mxu1 %v4272_v34  ;;  %v3599_v52 = vld [vmem:[#allocation3 + $0x44] sm:$0xf]  ;;  %v3772_v33 = vld [vmem:[#allocation3 + $0x5a4] sm:$0xf0] }
  0x6d   : > { %1885 = vmatpush.bf16.msrb.mxu3 %v3543_v47  ;;  %1858 = vmatpush.bf16.msrb.mxu1 %v2999_v54  ;;  %v3799_v47 = vld [vmem:[#allocation3 + $0x684] sm:$0xf]  ;;  %v3514_v35 = vld [vmem:[#allocation3 + $0x788] sm:$0xf] }
  0x6e   : > { %v2580_v53 = vld [vmem:[#allocation3 + $0x60] sm:$0xf0]  ;;  %v3836_v36 = vld [vmem:[#allocation3 + $0x7a4] sm:$0xf0] }
  0x6f   : > { %1872 = vmatpush.bf16.msrb.mxu2 %v3255_v55  ;;  %1845 = vmatpush.bf16.msrb.mxu0 %v2711_v2  ;;  %v3663_v54 = vld [vmem:[#allocation3 + $0x244] sm:$0xf]  ;;  %v3383_v55 = vor.u32 %v3799_v47, %v3380_v48  ;;  %v2583_v61 = vor.u32 %v3599_v52, %v2580_v53  ;;  %v2714_v40 = vld [vmem:[#allocation3 + $0x148] sm:$0xf] }
  0x70   : > { %v2836_v56 = vld [vmem:[#allocation3 + $0x260] sm:$0xf0]  ;;  %v3636_v41 = vld [vmem:[#allocation3 + $0x164] sm:$0xf0] }
  0x71   : > { %1886 = vmatpush.bf16.msrb.mxu3 %v3511_v59  ;;  %1859 = vmatpush.bf16.msrb.mxu1 %v2967_v6  ;;  %v3727_v57 = vld [vmem:[#allocation3 + $0x444] sm:$0xf]  ;;  %v2839_v0 = vor.u32 %v3663_v54, %v2836_v56  ;;  %v2970_v42 = vld [vmem:[#allocation3 + $0x348] sm:$0xf] }
  0x72   : > { %v3092_v58 = vld [vmem:[#allocation3 + $0x460] sm:$0xf0]  ;;  %v3700_v44 = vld [vmem:[#allocation3 + $0x364] sm:$0xf0] }
  0x73   : > { %1873 = vmatpush.bf16.msrb.mxu2 %v3223_v7  ;;  %1846 = vmatpush.bf16.msrb.mxu0 %v2679_v20  ;;  %v3791_v59 = vld [vmem:[#allocation3 + $0x644] sm:$0xf]  ;;  %v3095_v1 = vor.u32 %v3727_v57, %v3092_v58  ;;  %v3546_v20 = vld [vmem:[#allocation3 + $0x7c8] sm:$0xf] }
  0x74   : > { %v3348_v60 = vld [vmem:[#allocation3 + $0x660] sm:$0xf0]  ;;  %v3226_v45 = vld [vmem:[#allocation3 + $0x548] sm:$0xf] }
  0x75   : > { %1887 = vmatpush.bf16.msrb.mxu3 %v3479_v12  ;;  %1860 = vmatpush.bf16.msrb.mxu1 %v2935_v24  ;;  %v3591_v62 = vld [vmem:[#allocation3 + $0x4] sm:$0xf]  ;;  %v3351_v5 = vor.u32 %v3791_v59, %v3348_v60  ;;  %v3034_v12 = vld [vmem:[#allocation3 + $0x3c8] sm:$0xf] }
  0x76   : > { %v2548_v63 = vld [vmem:[#allocation3 + $0x20] sm:$0xf0]  ;;  %v3035_v24 = vor.u32 %v3716_v14, %v3034_v12  ;;  %v3764_v46 = vld [vmem:[#allocation3 + $0x564] sm:$0xf0] }
  0x77   : > { %1874 = vmatpush.bf16.msrb.mxu2 %v3191_v25  ;;  %1847 = vmatpush.bf16.msrb.mxu0 %v2647_v37  ;;  %v3655_v2 = vld [vmem:[#allocation3 + $0x204] sm:$0xf]  ;;  %v2551_v13 = vor.u32 %v3591_v62, %v2548_v63  ;;  %v3291_v25 = vor.u32 %v3780_v17, %v3290_v15  ;;  %v2747_v37 = vor.u32 %v3644_v28, %v2746_v26  ;;  %v3482_v47 = vld [vmem:[#allocation3 + $0x748] sm:$0xf] }
  0x78   : > { %v2804_v3 = vld [vmem:[#allocation3 + $0x220] sm:$0xf0]  ;;  %v3828_v48 = vld [vmem:[#allocation3 + $0x764] sm:$0xf0] }
  0x79   : > { %1888 = vmatpush.bf16.msrb.mxu3 %v3447_v30  ;;  %1861 = vmatpush.bf16.msrb.mxu1 %v2903_v38  ;;  %v3719_v4 = vld [vmem:[#allocation3 + $0x404] sm:$0xf]  ;;  %v2807_v18 = vor.u32 %v3655_v2, %v2804_v3  ;;  %v3547_v30 = vor.u32 %v3844_v21, %v3546_v20  ;;  %v3003_v38 = vor.u32 %v3708_v31, %v3002_v29  ;;  %v2682_v52 = vld [vmem:[#allocation3 + $0x108] sm:$0xf] }
  0x7a   : > { %v3060_v6 = vld [vmem:[#allocation3 + $0x420] sm:$0xf0]  ;;  %v3628_v53 = vld [vmem:[#allocation3 + $0x124] sm:$0xf0] }
  0x7b   : > { %1875 = vmatpush.bf16.msrb.mxu2 %v3159_v39  ;;  %1848 = vmatpush.bf16.msrb.mxu0 %v2615_v49  ;;  %v3783_v7 = vld [vmem:[#allocation3 + $0x604] sm:$0xf]  ;;  %v3063_v19 = vor.u32 %v3719_v4, %v3060_v6  ;;  %v3259_v39 = vor.u32 %v3772_v33, %v3258_v32  ;;  %v2715_v49 = vor.u32 %v3636_v41, %v2714_v40  ;;  %v2938_v54 = vld [vmem:[#allocation3 + $0x308] sm:$0xf] }
  0x7c   : > { %v3316_v8 = vld [vmem:[#allocation3 + $0x620] sm:$0xf0]  ;;  %v3692_v56 = vld [vmem:[#allocation3 + $0x324] sm:$0xf0] }
  0x7d   : > { %1889 = vmatpush.bf16.msrb.mxu3 %v3415_v43  ;;  %1862 = vmatpush.bf16.msrb.mxu1 %v2871_v50  ;;  %v3319_v22 = vor.u32 %v3783_v7, %v3316_v8  ;;  %v3515_v43 = vor.u32 %v3836_v36, %v3514_v35  ;;  %v2971_v50 = vor.u32 %v3700_v44, %v2970_v42  ;;  %v3194_v57 = vld [vmem:[#allocation3 + $0x508] sm:$0xf] }
  0x7e   : > { %v3756_v58 = vld [vmem:[#allocation3 + $0x524] sm:$0xf0]  ;;  %v2939_v62 = vor.u32 %v3692_v56, %v2938_v54  ;;  %v3776_v54 = vld [vmem:[#allocation3 + $0x5cc] sm:$0xf] }
  0x7f   : > { %1876 = vmatpush.bf16.msrb.mxu2 %v3127_v51  ;;  %1849 = vmatpush.bf16.msrb.mxu0 %v2583_v61  ;;  %v3227_v51 = vor.u32 %v3764_v46, %v3226_v45  ;;  %v3450_v59 = vld [vmem:[#allocation3 + $0x708] sm:$0xf]  ;;  %v2683_v61 = vor.u32 %v3628_v53, %v2682_v52  ;;  %v3195_v63 = vor.u32 %v3756_v58, %v3194_v57  ;;  %v3036_v53 = vld [vmem:[#allocation3 + $0x3e8] sm:$0xf0] }
  0x80   : > { %v3820_v60 = vld [vmem:[#allocation3 + $0x724] sm:$0xf0]  ;;  %v3840_v58 = vld [vmem:[#allocation3 + $0x7cc] sm:$0xf] }
  0x81   : > { %1890 = vmatpush.bf16.msrb.mxu3 %v3383_v55  ;;  %1863 = vmatpush.bf16.msrb.mxu1 %v2839_v0  ;;  %v3483_v55 = vor.u32 %v3828_v48, %v3482_v47  ;;  %v2650_v0 = vld [vmem:[#allocation3 + $0xc8] sm:$0xf]  ;;  %v3451_v3 = vor.u32 %v3820_v60, %v3450_v59  ;;  %v3548_v59 = vld [vmem:[#allocation3 + $0x7e8] sm:$0xf0] }
  0x82   : > { %v2906_v2 = vld [vmem:[#allocation3 + $0x2c8] sm:$0xf] }
  0x83   : > { %1877 = vmatpush.bf16.msrb.mxu2 %v3095_v1  ;;  %1850 = vmatpush.bf16.msrb.mxu0 %v2551_v13  ;;  %v3620_v1 = vld [vmem:[#allocation3 + $0xe4] sm:$0xf0] }
  0x84   : > { %v3684_v4 = vld [vmem:[#allocation3 + $0x2e4] sm:$0xf0]  ;;  %v2651_v10 = vor.u32 %v3620_v1, %v2650_v0  ;;  %v3640_v0 = vld [vmem:[#allocation3 + $0x18c] sm:$0xf] }
  0x85   : > { %1891 = vmatpush.bf16.msrb.mxu3 %v3351_v5  ;;  %1864 = vmatpush.bf16.msrb.mxu1 %v2807_v18  ;;  %v3162_v5 = vld [vmem:[#allocation3 + $0x4c8] sm:$0xf]  ;;  %v2907_v11 = vor.u32 %v3684_v4, %v2906_v2  ;;  %v2748_v1 = vld [vmem:[#allocation3 + $0x1a8] sm:$0xf0] }
  0x86   : > { %1851 = vmatmul.bf16.vlgmr.msrb.gmra.mxu0 %v4268_v27  ;;  %v3748_v6 = vld [vmem:[#allocation3 + $0x4e4] sm:$0xf0]  ;;  %v3704_v2 = vld [vmem:[#allocation3 + $0x38c] sm:$0xf] }
  0x87   : > { %1878 = vmatpush.bf16.msrb.mxu2 %v3063_v19  ;;  %1899 = vmatpush.bf16.msra.mxu0 %v2779_v23  ;;  %v3418_v7 = vld [vmem:[#allocation3 + $0x6c8] sm:$0xf]  ;;  %v3163_v12 = vor.u32 %v3748_v6, %v3162_v5  ;;  %v3004_v4 = vld [vmem:[#allocation3 + $0x3a8] sm:$0xf0] }
  0x88   : > { %1865 = vmatmul.bf16.vlgmr.msrb.gmra.mxu1 %v4272_v34  ;;  %v3812_v8 = vld [vmem:[#allocation3 + $0x6e4] sm:$0xf0]  ;;  %v3768_v5 = vld [vmem:[#allocation3 + $0x58c] sm:$0xf] }
  0x89   : > { %1892 = vmatpush.bf16.msrb.mxu3 %v3319_v22  ;;  %1913 = vmatpush.bf16.msra.mxu1 %v3035_v24  ;;  %v2618_v13 = vld [vmem:[#allocation3 + $0x88] sm:$0xf]  ;;  %v3419_v17 = vor.u32 %v3812_v8, %v3418_v7  ;;  %v3260_v6 = vld [vmem:[#allocation3 + $0x5a8] sm:$0xf0] }
  0x8a   : > { %1879 = vmatmul.bf16.vlgmr.msrb.gmra.mxu2 %v4258_v9  ;;  %v3612_v14 = vld [vmem:[#allocation3 + $0xa4] sm:$0xf0]  ;;  %v3832_v7 = vld [vmem:[#allocation3 + $0x78c] sm:$0xf] }
  0x8b   : > { %1927 = vmatpush.bf16.msra.mxu2 %v3291_v25  ;;  %1900 = vmatpush.bf16.msra.mxu0 %v2747_v37  ;;  %v2874_v15 = vld [vmem:[#allocation3 + $0x288] sm:$0xf]  ;;  %v2619_v23 = vor.u32 %v3612_v14, %v2618_v13  ;;  %v3516_v8 = vld [vmem:[#allocation3 + $0x7a8] sm:$0xf0] }
  0x8c   : > { %1893 = vmatmul.bf16.vlgmr.msrb.gmra.mxu3 %v4262_v16  ;;  %v3676_v18 = vld [vmem:[#allocation3 + $0x2a4] sm:$0xf0]  ;;  %v3632_v13 = vld [vmem:[#allocation3 + $0x14c] sm:$0xf] }
  0x8d   : > { %1941 = vmatpush.bf16.msra.mxu3 %v3547_v30  ;;  %1914 = vmatpush.bf16.msra.mxu1 %v3003_v38  ;;  %v3130_v19 = vld [vmem:[#allocation3 + $0x488] sm:$0xf]  ;;  %v2875_v24 = vor.u32 %v3676_v18, %v2874_v15  ;;  %v2716_v14 = vld [vmem:[#allocation3 + $0x168] sm:$0xf0] }
  0x8e   : > { %v3740_v20 = vld [vmem:[#allocation3 + $0x4a4] sm:$0xf0]  ;;  %v3696_v15 = vld [vmem:[#allocation3 + $0x34c] sm:$0xf] }
  0x8f   : > { %1928 = vmatpush.bf16.msra.mxu2 %v3259_v39  ;;  %1901 = vmatpush.bf16.msra.mxu0 %v2715_v49  ;;  %v3386_v21 = vld [vmem:[#allocation3 + $0x688] sm:$0xf]  ;;  %v3131_v25 = vor.u32 %v3740_v20, %v3130_v19  ;;  %v3648_v49 = vld [vmem:[#allocation3 + $0x1cc] sm:$0xf] }
  0x90   : > { %v3804_v22 = vld [vmem:[#allocation3 + $0x6a4] sm:$0xf0]  ;;  %v2972_v18 = vld [vmem:[#allocation3 + $0x368] sm:$0xf0] }
  0x91   : > { %1942 = vmatpush.bf16.msra.mxu3 %v3515_v43  ;;  %1915 = vmatpush.bf16.msra.mxu1 %v2971_v50  ;;  %v2586_v26 = vld [vmem:[#allocation3 + $0x48] sm:$0xf]  ;;  %v3387_v30 = vor.u32 %v3804_v22, %v3386_v21  ;;  %v2780_v50 = vld [vmem:[#allocation3 + $0x1e8] sm:$0xf0] }
  0x92   : > { %v3604_v28 = vld [vmem:[#allocation3 + $0x64] sm:$0xf0]  ;;  %v3760_v19 = vld [vmem:[#allocation3 + $0x54c] sm:$0xf] }
  0x93   : > { %1929 = vmatpush.bf16.msra.mxu2 %v3227_v51  ;;  %1902 = vmatpush.bf16.msra.mxu0 %v2683_v61  ;;  %v2842_v29 = vld [vmem:[#allocation3 + $0x248] sm:$0xf]  ;;  %v2587_v37 = vor.u32 %v3604_v28, %v2586_v26  ;;  %v3712_v51 = vld [vmem:[#allocation3 + $0x3cc] sm:$0xf]  ;;  %v2783_v61 = vor.u32 %v3648_v49, %v2780_v50 }
  0x94   : > { %v3668_v31 = vld [vmem:[#allocation3 + $0x264] sm:$0xf0]  ;;  %v3228_v20 = vld [vmem:[#allocation3 + $0x568] sm:$0xf0] }
  0x95   : > { %1943 = vmatpush.bf16.msra.mxu3 %v3483_v55  ;;  %1916 = vmatpush.bf16.msra.mxu1 %v2939_v62  ;;  %v3098_v32 = vld [vmem:[#allocation3 + $0x448] sm:$0xf]  ;;  %v2843_v40 = vor.u32 %v3668_v31, %v2842_v29  ;;  %v3292_v55 = vld [vmem:[#allocation3 + $0x5e8] sm:$0xf0]  ;;  %v3039_v62 = vor.u32 %v3712_v51, %v3036_v53 }
  0x96   : > { %v3732_v33 = vld [vmem:[#allocation3 + $0x464] sm:$0xf0]  ;;  %v3824_v21 = vld [vmem:[#allocation3 + $0x74c] sm:$0xf] }
  0x97   : > { %1930 = vmatpush.bf16.msra.mxu2 %v3195_v63  ;;  %1903 = vmatpush.bf16.msra.mxu0 %v2651_v10  ;;  %v3354_v35 = vld [vmem:[#allocation3 + $0x648] sm:$0xf]  ;;  %v3099_v41 = vor.u32 %v3732_v33, %v3098_v32  ;;  %v3295_v63 = vor.u32 %v3776_v54, %v3292_v55  ;;  %v2751_v10 = vor.u32 %v3640_v0, %v2748_v1  ;;  %v3484_v22 = vld [vmem:[#allocation3 + $0x768] sm:$0xf0] }
  0x98   : > { %v3796_v36 = vld [vmem:[#allocation3 + $0x664] sm:$0xf0]  ;;  %v3624_v26 = vld [vmem:[#allocation3 + $0x10c] sm:$0xf] }
  0x99   : > { %1944 = vmatpush.bf16.msra.mxu3 %v3451_v3  ;;  %1917 = vmatpush.bf16.msra.mxu1 %v2907_v11  ;;  %v2554_v38 = vld [vmem:[#allocation3 + $0x8] sm:$0xf]  ;;  %v3355_v45 = vor.u32 %v3796_v36, %v3354_v35  ;;  %v3551_v3 = vor.u32 %v3840_v58, %v3548_v59  ;;  %v3007_v11 = vor.u32 %v3704_v2, %v3004_v4  ;;  %v2684_v28 = vld [vmem:[#allocation3 + $0x128] sm:$0xf0] }
  0x9a   : > { %v3596_v39 = vld [vmem:[#allocation3 + $0x24] sm:$0xf0]  ;;  %v3688_v29 = vld [vmem:[#allocation3 + $0x30c] sm:$0xf] }
  0x9b   : > { %1931 = vmatpush.bf16.msra.mxu2 %v3163_v12  ;;  %1904 = vmatpush.bf16.msra.mxu0 %v2619_v23  ;;  %v2810_v42 = vld [vmem:[#allocation3 + $0x208] sm:$0xf]  ;;  %v2555_v52 = vor.u32 %v3596_v39, %v2554_v38  ;;  %v3263_v12 = vor.u32 %v3768_v5, %v3260_v6  ;;  %v2719_v23 = vor.u32 %v3632_v13, %v2716_v14  ;;  %v2940_v31 = vld [vmem:[#allocation3 + $0x328] sm:$0xf0] }
  0x9c   : > { %v3660_v43 = vld [vmem:[#allocation3 + $0x224] sm:$0xf0]  ;;  %v3752_v32 = vld [vmem:[#allocation3 + $0x50c] sm:$0xf]  ;;  %v2943_v38 = vor.u32 %v3688_v29, %v2940_v31  ;;  %v3298_v29 = vld [vmem:[#allocation3 + $0x5d0] sm:$0xf] }
  0x9d   : > { %1945 = vmatpush.bf16.msra.mxu3 %v3419_v17  ;;  %1918 = vmatpush.bf16.msra.mxu1 %v2875_v24  ;;  %v3066_v44 = vld [vmem:[#allocation3 + $0x408] sm:$0xf]  ;;  %v2811_v56 = vor.u32 %v3660_v43, %v2810_v42  ;;  %v3519_v17 = vor.u32 %v3832_v7, %v3516_v8  ;;  %v2975_v24 = vor.u32 %v3696_v15, %v2972_v18  ;;  %v3196_v33 = vld [vmem:[#allocation3 + $0x528] sm:$0xf0] }
  0x9e   : > { %v3724_v46 = vld [vmem:[#allocation3 + $0x424] sm:$0xf0]  ;;  %v3816_v35 = vld [vmem:[#allocation3 + $0x70c] sm:$0xf]  ;;  %v3199_v39 = vor.u32 %v3752_v32, %v3196_v33  ;;  %v3554_v33 = vld [vmem:[#allocation3 + $0x7d0] sm:$0xf] }
  0x9f   : > { %1932 = vmatpush.bf16.msra.mxu2 %v3131_v25  ;;  %v3322_v47 = vld [vmem:[#allocation3 + $0x608] sm:$0xf]  ;;  %1905 = vmatpush.bf16.msra.mxu0 %v2587_v37  ;;  %v3067_v57 = vor.u32 %v3724_v46, %v3066_v44  ;;  %v3231_v25 = vor.u32 %v3760_v19, %v3228_v20  ;;  %v3452_v36 = vld [vmem:[#allocation3 + $0x728] sm:$0xf0]  ;;  %v2687_v37 = vor.u32 %v3624_v26, %v2684_v28  ;;  %v3717_v28 = vld [vmem:[#allocation3 + $0x3ec] sm:$0xf0] }
  0xa0   : > { %v3788_v48 = vld [vmem:[#allocation3 + $0x624] sm:$0xf0]  ;;  %v3680_v42 = vld [vmem:[#allocation3 + $0x2cc] sm:$0xf]  ;;  %v3455_v43 = vor.u32 %v3816_v35, %v3452_v36  ;;  %v3845_v35 = vld [vmem:[#allocation3 + $0x7ec] sm:$0xf0] }
  0xa1   : > { %1946 = vmatpush.bf16.msra.mxu3 %v3387_v30  ;;  %1919 = vmatpush.bf16.msra.mxu1 %v2843_v40  ;;  %v3323_v60 = vor.u32 %v3788_v48, %v3322_v47  ;;  %v3487_v30 = vor.u32 %v3824_v21, %v3484_v22  ;;  %v3616_v40 = vld [vmem:[#allocation3 + $0xcc] sm:$0xf] }
  0xa2   : > { %v2908_v44 = vld [vmem:[#allocation3 + $0x2e8] sm:$0xf0] }
  0xa3   : > { %1933 = vmatpush.bf16.msra.mxu2 %v3099_v41  ;;  %1906 = vmatpush.bf16.msra.mxu0 %v2555_v52  ;;  %v2652_v41 = vld [vmem:[#allocation3 + $0xe8] sm:$0xf0]  ;;  %v2911_v50 = vor.u32 %v3680_v42, %v2908_v44  ;;  %v3010_v42 = vld [vmem:[#allocation3 + $0x390] sm:$0xf] }
  0xa4   : > { %v3164_v46 = vld [vmem:[#allocation3 + $0x4e8] sm:$0xf0]  ;;  %v2655_v49 = vor.u32 %v3616_v40, %v2652_v41  ;;  %v2754_v40 = vld [vmem:[#allocation3 + $0x190] sm:$0xf] }
  0xa5   : > { %1947 = vmatpush.bf16.msra.mxu3 %v3355_v45  ;;  %1920 = vmatpush.bf16.msra.mxu1 %v2811_v56  ;;  %v3744_v45 = vld [vmem:[#allocation3 + $0x4cc] sm:$0xf]  ;;  %v3645_v41 = vld [vmem:[#allocation3 + $0x1ac] sm:$0xf0] }
  0xa6   : > { %1907 = vmatmul.bf16.vlgmr.msra.gmra.mxu0 %v4268_v27  ;;  %v3808_v47 = vld [vmem:[#allocation3 + $0x6cc] sm:$0xf]  ;;  %v3167_v51 = vor.u32 %v3744_v45, %v3164_v46  ;;  %v3709_v44 = vld [vmem:[#allocation3 + $0x3ac] sm:$0xf0] }
  0xa7   : > { %1934 = vmatpush.bf16.msra.mxu2 %v3067_v57  ;;  %1955 = vmatpush.bf16.msrb.mxu0 %v2783_v61  ;;  %v3420_v48 = vld [vmem:[#allocation3 + $0x6e8] sm:$0xf0]  ;;  %v3266_v45 = vld [vmem:[#allocation3 + $0x590] sm:$0xf] }
  0xa8   : > { %1921 = vmatmul.bf16.vlgmr.msra.gmra.mxu1 %v4272_v34  ;;  %v3608_v52 = vld [vmem:[#allocation3 + $0x8c] sm:$0xf]  ;;  %v3423_v55 = vor.u32 %v3808_v47, %v3420_v48  ;;  %v3773_v46 = vld [vmem:[#allocation3 + $0x5ac] sm:$0xf0] }
  0xa9   : > { %1948 = vmatpush.bf16.msra.mxu3 %v3323_v60  ;;  %1969 = vmatpush.bf16.msrb.mxu1 %v3039_v62  ;;  %v2620_v53 = vld [vmem:[#allocation3 + $0xa8] sm:$0xf0]  ;;  %v3522_v47 = vld [vmem:[#allocation3 + $0x790] sm:$0xf] }
  0xaa   : > { %1935 = vmatmul.bf16.vlgmr.msra.gmra.mxu2 %v4258_v9  ;;  %v3672_v54 = vld [vmem:[#allocation3 + $0x28c] sm:$0xf]  ;;  %v2623_v61 = vor.u32 %v3608_v52, %v2620_v53  ;;  %v3837_v48 = vld [vmem:[#allocation3 + $0x7ac] sm:$0xf0] }
  0xab   : > { %1983 = vmatpush.bf16.msrb.mxu2 %v3295_v63  ;;  %1956 = vmatpush.bf16.msrb.mxu0 %v2751_v10  ;;  %v2876_v56 = vld [vmem:[#allocation3 + $0x2a8] sm:$0xf0]  ;;  %v2722_v52 = vld [vmem:[#allocation3 + $0x150] sm:$0xf] }
  0xac   : > { %1949 = vmatmul.bf16.vlgmr.msra.gmra.mxu3 %v4262_v16  ;;  %v3736_v57 = vld [vmem:[#allocation3 + $0x48c] sm:$0xf]  ;;  %v2879_v62 = vor.u32 %v3672_v54, %v2876_v56  ;;  %v3637_v53 = vld [vmem:[#allocation3 + $0x16c] sm:$0xf0] }
  0xad   : > { %1997 = vmatpush.bf16.msrb.mxu3 %v3551_v3  ;;  %1970 = vmatpush.bf16.msrb.mxu1 %v3007_v11  ;;  %v3132_v58 = vld [vmem:[#allocation3 + $0x4a8] sm:$0xf0]  ;;  %v2978_v54 = vld [vmem:[#allocation3 + $0x350] sm:$0xf] }
  0xae   : > { %v3800_v59 = vld [vmem:[#allocation3 + $0x68c] sm:$0xf]  ;;  %v3135_v63 = vor.u32 %v3736_v57, %v3132_v58  ;;  %v3701_v56 = vld [vmem:[#allocation3 + $0x36c] sm:$0xf0] }
  0xaf   : > { %1984 = vmatpush.bf16.msrb.mxu2 %v3263_v12  ;;  %1957 = vmatpush.bf16.msrb.mxu0 %v2719_v23  ;;  %v3388_v60 = vld [vmem:[#allocation3 + $0x6a8] sm:$0xf0]  ;;  %v2786_v23 = vld [vmem:[#allocation3 + $0x1d0] sm:$0xf] }
  0xb0   : > { %v3600_v0 = vld [vmem:[#allocation3 + $0x4c] sm:$0xf]  ;;  %v3391_v3 = vor.u32 %v3800_v59, %v3388_v60  ;;  %v3234_v57 = vld [vmem:[#allocation3 + $0x550] sm:$0xf] }
  0xb1   : > { %1998 = vmatpush.bf16.msrb.mxu3 %v3519_v17  ;;  %1971 = vmatpush.bf16.msrb.mxu1 %v2975_v24  ;;  %v2588_v1 = vld [vmem:[#allocation3 + $0x68] sm:$0xf0]  ;;  %v3653_v24 = vld [vmem:[#allocation3 + $0x1ec] sm:$0xf0] }
  0xb2   : > { %v3664_v2 = vld [vmem:[#allocation3 + $0x24c] sm:$0xf]  ;;  %v2591_v10 = vor.u32 %v3600_v0, %v2588_v1  ;;  %v3765_v58 = vld [vmem:[#allocation3 + $0x56c] sm:$0xf0] }
  0xb3   : > { %1985 = vmatpush.bf16.msrb.mxu2 %v3231_v25  ;;  %1958 = vmatpush.bf16.msrb.mxu0 %v2687_v37  ;;  %v2844_v4 = vld [vmem:[#allocation3 + $0x268] sm:$0xf0]  ;;  %v3042_v25 = vld [vmem:[#allocation3 + $0x3d0] sm:$0xf]  ;;  %v2787_v37 = vor.u32 %v3653_v24, %v2786_v23 }
  0xb4   : > { %v3728_v5 = vld [vmem:[#allocation3 + $0x44c] sm:$0xf]  ;;  %v2847_v13 = vor.u32 %v3664_v2, %v2844_v4  ;;  %v3490_v59 = vld [vmem:[#allocation3 + $0x750] sm:$0xf] }
  0xb5   : > { %1999 = vmatpush.bf16.msrb.mxu3 %v3487_v30  ;;  %1972 = vmatpush.bf16.msrb.mxu1 %v2943_v38  ;;  %v3100_v6 = vld [vmem:[#allocation3 + $0x468] sm:$0xf0]  ;;  %v3781_v30 = vld [vmem:[#allocation3 + $0x5ec] sm:$0xf0]  ;;  %v3043_v38 = vor.u32 %v3717_v28, %v3042_v25 }
  0xb6   : > { %v3792_v7 = vld [vmem:[#allocation3 + $0x64c] sm:$0xf]  ;;  %v3103_v14 = vor.u32 %v3728_v5, %v3100_v6  ;;  %v3829_v60 = vld [vmem:[#allocation3 + $0x76c] sm:$0xf0] }
  0xb7   : > { %1986 = vmatpush.bf16.msrb.mxu2 %v3199_v39  ;;  %1959 = vmatpush.bf16.msrb.mxu0 %v2655_v49  ;;  %v3356_v8 = vld [vmem:[#allocation3 + $0x668] sm:$0xf0]  ;;  %v3299_v39 = vor.u32 %v3781_v30, %v3298_v29  ;;  %v2755_v49 = vor.u32 %v3645_v41, %v2754_v40  ;;  %v2690_v0 = vld [vmem:[#allocation3 + $0x110] sm:$0xf] }
  0xb8   : > { %v3592_v11 = vld [vmem:[#allocation3 + $0xc] sm:$0xf]  ;;  %v3359_v19 = vor.u32 %v3792_v7, %v3356_v8  ;;  %v3629_v1 = vld [vmem:[#allocation3 + $0x12c] sm:$0xf0] }
  0xb9   : > { %2000 = vmatpush.bf16.msrb.mxu3 %v3455_v43  ;;  %1973 = vmatpush.bf16.msrb.mxu1 %v2911_v50  ;;  %v2556_v12 = vld [vmem:[#allocation3 + $0x28] sm:$0xf0]  ;;  %v3555_v43 = vor.u32 %v3845_v35, %v3554_v33  ;;  %v3011_v50 = vor.u32 %v3709_v44, %v3010_v42  ;;  %v2946_v2 = vld [vmem:[#allocation3 + $0x310] sm:$0xf] }
  0xba   : > { %v3656_v15 = vld [vmem:[#allocation3 + $0x20c] sm:$0xf]  ;;  %v2559_v26 = vor.u32 %v3592_v11, %v2556_v12  ;;  %v3693_v4 = vld [vmem:[#allocation3 + $0x32c] sm:$0xf0] }
  0xbb   : > { %1987 = vmatpush.bf16.msrb.mxu2 %v3167_v51  ;;  %1960 = vmatpush.bf16.msrb.mxu0 %v2623_v61  ;;  %v2812_v17 = vld [vmem:[#allocation3 + $0x228] sm:$0xf0]  ;;  %v3267_v51 = vor.u32 %v3773_v46, %v3266_v45  ;;  %v2723_v61 = vor.u32 %v3637_v53, %v2722_v52  ;;  %v3202_v5 = vld [vmem:[#allocation3 + $0x510] sm:$0xf]  ;;  %v2947_v11 = vor.u32 %v3693_v4, %v2946_v2  ;;  %v3777_v2 = vld [vmem:[#allocation3 + $0x5d4] sm:$0xf] }
  0xbc   : > { %v3720_v18 = vld [vmem:[#allocation3 + $0x40c] sm:$0xf]  ;;  %v2815_v31 = vor.u32 %v3656_v15, %v2812_v17  ;;  %v3757_v6 = vld [vmem:[#allocation3 + $0x52c] sm:$0xf0] }
  0xbd   : > { %2001 = vmatpush.bf16.msrb.mxu3 %v3423_v55  ;;  %1974 = vmatpush.bf16.msrb.mxu1 %v2879_v62  ;;  %v3068_v20 = vld [vmem:[#allocation3 + $0x428] sm:$0xf0]  ;;  %v3523_v55 = vor.u32 %v3837_v48, %v3522_v47  ;;  %v2979_v62 = vor.u32 %v3701_v56, %v2978_v54  ;;  %v3458_v7 = vld [vmem:[#allocation3 + $0x710] sm:$0xf]  ;;  %v3203_v12 = vor.u32 %v3757_v6, %v3202_v5  ;;  %v3841_v6 = vld [vmem:[#allocation3 + $0x7d4] sm:$0xf] }
  0xbe   : > { %v3784_v21 = vld [vmem:[#allocation3 + $0x60c] sm:$0xf]  ;;  %v3071_v32 = vor.u32 %v3720_v18, %v3068_v20  ;;  %v3821_v8 = vld [vmem:[#allocation3 + $0x72c] sm:$0xf0] }
  0xbf   : > { %1988 = vmatpush.bf16.msrb.mxu2 %v3135_v63  ;;  %v3324_v22 = vld [vmem:[#allocation3 + $0x628] sm:$0xf0]  ;;  %1961 = vmatpush.bf16.msrb.mxu0 %v2591_v10  ;;  %v3235_v63 = vor.u32 %v3765_v58, %v3234_v57  ;;  %v2691_v10 = vor.u32 %v3629_v1, %v2690_v0  ;;  %v2914_v15 = vld [vmem:[#allocation3 + $0x2d0] sm:$0xf]  ;;  %v3459_v17 = vor.u32 %v3821_v8, %v3458_v7  ;;  %v3044_v1 = vld [vmem:[#allocation3 + $0x3f0] sm:$0xf0] }
  0xc0   : > { %v3327_v36 = vor.u32 %v3784_v21, %v3324_v22  ;;  %v3685_v18 = vld [vmem:[#allocation3 + $0x2ec] sm:$0xf0]  ;;  %v3556_v7 = vld [vmem:[#allocation3 + $0x7f0] sm:$0xf0] }
  0xc1   : > { %2002 = vmatpush.bf16.msrb.mxu3 %v3391_v3  ;;  %1975 = vmatpush.bf16.msrb.mxu1 %v2847_v13  ;;  %v3491_v3 = vor.u32 %v3829_v60, %v3490_v59  ;;  %v2658_v13 = vld [vmem:[#allocation3 + $0xd0] sm:$0xf]  ;;  %v2915_v24 = vor.u32 %v3685_v18, %v2914_v15  ;;  %v3705_v15 = vld [vmem:[#allocation3 + $0x394] sm:$0xf] }
  0xc2   : > { %v3749_v20 = vld [vmem:[#allocation3 + $0x4ec] sm:$0xf0]  ;;  %v3012_v18 = vld [vmem:[#allocation3 + $0x3b0] sm:$0xf0] }
  0xc3   : > { %1989 = vmatpush.bf16.msrb.mxu2 %v3103_v14  ;;  %1962 = vmatpush.bf16.msrb.mxu0 %v2559_v26  ;;  %v3621_v14 = vld [vmem:[#allocation3 + $0xec] sm:$0xf0] }
  0xc4   : > { %v3426_v21 = vld [vmem:[#allocation3 + $0x6d0] sm:$0xf]  ;;  %v2659_v23 = vor.u32 %v3621_v14, %v2658_v13  ;;  %v3641_v13 = vld [vmem:[#allocation3 + $0x194] sm:$0xf] }
  0xc5   : > { %2003 = vmatpush.bf16.msrb.mxu3 %v3359_v19  ;;  %1976 = vmatpush.bf16.msrb.mxu1 %v2815_v31  ;;  %v3170_v19 = vld [vmem:[#allocation3 + $0x4d0] sm:$0xf]  ;;  %v2756_v14 = vld [vmem:[#allocation3 + $0x1b0] sm:$0xf0] }
  0xc6   : > { %1963 = vmatmul.bf16.vlgmr.msrb.gmra.mxu0 %v4268_v27  ;;  %v3813_v22 = vld [vmem:[#allocation3 + $0x6ec] sm:$0xf0]  ;;  %v3171_v25 = vor.u32 %v3749_v20, %v3170_v19  ;;  %v3769_v19 = vld [vmem:[#allocation3 + $0x594] sm:$0xf] }
  0xc7   : > { %1990 = vmatpush.bf16.msrb.mxu2 %v3071_v32  ;;  %2011 = vmatpush.bf16.msra.mxu0 %v2787_v37  ;;  %v2626_v26 = vld [vmem:[#allocation3 + $0x90] sm:$0xf]  ;;  %v3427_v30 = vor.u32 %v3813_v22, %v3426_v21  ;;  %v3268_v20 = vld [vmem:[#allocation3 + $0x5b0] sm:$0xf0] }
  0xc8   : > { %1977 = vmatmul.bf16.vlgmr.msrb.gmra.mxu1 %v4272_v34  ;;  %v3613_v28 = vld [vmem:[#allocation3 + $0xac] sm:$0xf0]  ;;  %v3833_v21 = vld [vmem:[#allocation3 + $0x794] sm:$0xf] }
  0xc9   : > { %2004 = vmatpush.bf16.msrb.mxu3 %v3327_v36  ;;  %2025 = vmatpush.bf16.msra.mxu1 %v3043_v38  ;;  %v2882_v29 = vld [vmem:[#allocation3 + $0x290] sm:$0xf]  ;;  %v2627_v37 = vor.u32 %v3613_v28, %v2626_v26  ;;  %v3524_v22 = vld [vmem:[#allocation3 + $0x7b0] sm:$0xf0] }
  0xca   : > { %1991 = vmatmul.bf16.vlgmr.msrb.gmra.mxu2 %v4258_v9  ;;  %v3677_v31 = vld [vmem:[#allocation3 + $0x2ac] sm:$0xf0]  ;;  %v3633_v26 = vld [vmem:[#allocation3 + $0x154] sm:$0xf] }
  0xcb   : > { %2039 = vmatpush.bf16.msra.mxu2 %v3299_v39  ;;  %2012 = vmatpush.bf16.msra.mxu0 %v2755_v49  ;;  %v3138_v32 = vld [vmem:[#allocation3 + $0x490] sm:$0xf]  ;;  %v2883_v38 = vor.u32 %v3677_v31, %v2882_v29  ;;  %v2724_v28 = vld [vmem:[#allocation3 + $0x170] sm:$0xf0] }
  0xcc   : > { %2005 = vmatmul.bf16.vlgmr.msrb.gmra.mxu3 %v4262_v16  ;;  %v3741_v33 = vld [vmem:[#allocation3 + $0x4ac] sm:$0xf0]  ;;  %v3697_v29 = vld [vmem:[#allocation3 + $0x354] sm:$0xf] }
  0xcd   : > { %2053 = vmatpush.bf16.msra.mxu3 %v3555_v43  ;;  %2026 = vmatpush.bf16.msra.mxu1 %v3011_v50  ;;  %v3394_v35 = vld [vmem:[#allocation3 + $0x690] sm:$0xf]  ;;  %v3139_v39 = vor.u32 %v3741_v33, %v3138_v32  ;;  %v2980_v31 = vld [vmem:[#allocation3 + $0x370] sm:$0xf0] }
  0xce   : > { %v3805_v36 = vld [vmem:[#allocation3 + $0x6ac] sm:$0xf0]  ;;  %v3761_v32 = vld [vmem:[#allocation3 + $0x554] sm:$0xf] }
  0xcf   : > { %2040 = vmatpush.bf16.msra.mxu2 %v3267_v51  ;;  %2013 = vmatpush.bf16.msra.mxu0 %v2723_v61  ;;  %v2594_v40 = vld [vmem:[#allocation3 + $0x50] sm:$0xf]  ;;  %v3395_v43 = vor.u32 %v3805_v36, %v3394_v35  ;;  %v3649_v61 = vld [vmem:[#allocation3 + $0x1d4] sm:$0xf] }
  0xd0   : > { %v3605_v41 = vld [vmem:[#allocation3 + $0x6c] sm:$0xf0]  ;;  %v3236_v33 = vld [vmem:[#allocation3 + $0x570] sm:$0xf0] }
  0xd1   : > { %2054 = vmatpush.bf16.msra.mxu3 %v3523_v55  ;;  %2027 = vmatpush.bf16.msra.mxu1 %v2979_v62  ;;  %v2850_v42 = vld [vmem:[#allocation3 + $0x250] sm:$0xf]  ;;  %v2595_v49 = vor.u32 %v3605_v41, %v2594_v40  ;;  %v2788_v62 = vld [vmem:[#allocation3 + $0x1f0] sm:$0xf0] }
  0xd2   : > { %v3669_v44 = vld [vmem:[#allocation3 + $0x26c] sm:$0xf0]  ;;  %v3825_v35 = vld [vmem:[#allocation3 + $0x754] sm:$0xf] }
  0xd3   : > { %2041 = vmatpush.bf16.msra.mxu2 %v3235_v63  ;;  %2014 = vmatpush.bf16.msra.mxu0 %v2691_v10  ;;  %v3106_v45 = vld [vmem:[#allocation3 + $0x450] sm:$0xf]  ;;  %v2851_v52 = vor.u32 %v3669_v44, %v2850_v42  ;;  %v3713_v63 = vld [vmem:[#allocation3 + $0x3d4] sm:$0xf]  ;;  %v2791_v10 = vor.u32 %v3649_v61, %v2788_v62 }
  0xd4   : > { %v3733_v46 = vld [vmem:[#allocation3 + $0x46c] sm:$0xf0]  ;;  %v3492_v36 = vld [vmem:[#allocation3 + $0x770] sm:$0xf0] }
  0xd5   : > { %2055 = vmatpush.bf16.msra.mxu3 %v3491_v3  ;;  %2028 = vmatpush.bf16.msra.mxu1 %v2947_v11  ;;  %v3362_v47 = vld [vmem:[#allocation3 + $0x650] sm:$0xf]  ;;  %v3107_v53 = vor.u32 %v3733_v46, %v3106_v45  ;;  %v3300_v3 = vld [vmem:[#allocation3 + $0x5f0] sm:$0xf0]  ;;  %v3047_v11 = vor.u32 %v3713_v63, %v3044_v1 }
  0xd6   : > { %v3797_v48 = vld [vmem:[#allocation3 + $0x66c] sm:$0xf0]  ;;  %v3625_v40 = vld [vmem:[#allocation3 + $0x114] sm:$0xf] }
  0xd7   : > { %2042 = vmatpush.bf16.msra.mxu2 %v3203_v12  ;;  %2015 = vmatpush.bf16.msra.mxu0 %v2659_v23  ;;  %v2562_v50 = vld [vmem:[#allocation3 + $0x10] sm:$0xf]  ;;  %v3363_v57 = vor.u32 %v3797_v48, %v3362_v47  ;;  %v3303_v12 = vor.u32 %v3777_v2, %v3300_v3  ;;  %v2759_v23 = vor.u32 %v3641_v13, %v2756_v14  ;;  %v2692_v41 = vld [vmem:[#allocation3 + $0x130] sm:$0xf0] }
  0xd8   : > { %v3597_v51 = vld [vmem:[#allocation3 + $0x2c] sm:$0xf0]  ;;  %v3689_v42 = vld [vmem:[#allocation3 + $0x314] sm:$0xf] }
  0xd9   : > { %2056 = vmatpush.bf16.msra.mxu3 %v3459_v17  ;;  %2029 = vmatpush.bf16.msra.mxu1 %v2915_v24  ;;  %v2818_v54 = vld [vmem:[#allocation3 + $0x210] sm:$0xf]  ;;  %v2563_v0 = vor.u32 %v3597_v51, %v2562_v50  ;;  %v3559_v17 = vor.u32 %v3841_v6, %v3556_v7  ;;  %v3015_v24 = vor.u32 %v3705_v15, %v3012_v18  ;;  %v2948_v44 = vld [vmem:[#allocation3 + $0x330] sm:$0xf0] }
  0xda   : > { %v3661_v55 = vld [vmem:[#allocation3 + $0x22c] sm:$0xf0]  ;;  %v3753_v45 = vld [vmem:[#allocation3 + $0x514] sm:$0xf]  ;;  %v2951_v50 = vor.u32 %v3689_v42, %v2948_v44  ;;  %v2794_v44 = vld [vmem:[#allocation3 + $0x1d8] sm:$0xf] }
  0xdb   : > { %2043 = vmatpush.bf16.msra.mxu2 %v3171_v25  ;;  %2016 = vmatpush.bf16.msra.mxu0 %v2627_v37  ;;  %v3074_v56 = vld [vmem:[#allocation3 + $0x410] sm:$0xf]  ;;  %v2819_v4 = vor.u32 %v3661_v55, %v2818_v54  ;;  %v3271_v25 = vor.u32 %v3769_v19, %v3268_v20  ;;  %v2727_v37 = vor.u32 %v3633_v26, %v2724_v28  ;;  %v3204_v46 = vld [vmem:[#allocation3 + $0x530] sm:$0xf0] }
  0xdc   : > { %v3725_v58 = vld [vmem:[#allocation3 + $0x42c] sm:$0xf0]  ;;  %v3817_v47 = vld [vmem:[#allocation3 + $0x714] sm:$0xf]  ;;  %v3207_v51 = vor.u32 %v3753_v45, %v3204_v46  ;;  %v3654_v45 = vld [vmem:[#allocation3 + $0x1f4] sm:$0xf0] }
  0xdd   : > { %2057 = vmatpush.bf16.msra.mxu3 %v3427_v30  ;;  %2030 = vmatpush.bf16.msra.mxu1 %v2883_v38  ;;  %v3330_v59 = vld [vmem:[#allocation3 + $0x610] sm:$0xf]  ;;  %v3075_v5 = vor.u32 %v3725_v58, %v3074_v56  ;;  %v3527_v30 = vor.u32 %v3833_v21, %v3524_v22  ;;  %v2983_v38 = vor.u32 %v3697_v29, %v2980_v31  ;;  %v3460_v48 = vld [vmem:[#allocation3 + $0x730] sm:$0xf0]  ;;  %v3050_v46 = vld [vmem:[#allocation3 + $0x3d8] sm:$0xf] }
  0xde   : > { %v3789_v60 = vld [vmem:[#allocation3 + $0x62c] sm:$0xf0]  ;;  %v3681_v54 = vld [vmem:[#allocation3 + $0x2d4] sm:$0xf]  ;;  %v3463_v55 = vor.u32 %v3817_v47, %v3460_v48  ;;  %v3718_v48 = vld [vmem:[#allocation3 + $0x3f4] sm:$0xf0] }
  0xdf   : > { %2044 = vmatpush.bf16.msra.mxu2 %v3139_v39  ;;  %2017 = vmatpush.bf16.msra.mxu0 %v2595_v49  ;;  %v3331_v8 = vor.u32 %v3789_v60, %v3330_v59  ;;  %v3239_v39 = vor.u32 %v3761_v32, %v3236_v33  ;;  %v2695_v49 = vor.u32 %v3625_v40, %v2692_v41  ;;  %v2916_v56 = vld [vmem:[#allocation3 + $0x2f0] sm:$0xf0] }
  0xe0   : > { %v3172_v58 = vld [vmem:[#allocation3 + $0x4f0] sm:$0xf0]  ;;  %v2919_v62 = vor.u32 %v3681_v54, %v2916_v56  ;;  %v3562_v54 = vld [vmem:[#allocation3 + $0x7d8] sm:$0xf] }
  0xe1   : > { %2058 = vmatpush.bf16.msra.mxu3 %v3395_v43  ;;  %2031 = vmatpush.bf16.msra.mxu1 %v2851_v52  ;;  %v3495_v43 = vor.u32 %v3825_v35, %v3492_v36  ;;  %v3617_v52 = vld [vmem:[#allocation3 + $0xd4] sm:$0xf] }
  0xe2   : > { %v3809_v59 = vld [vmem:[#allocation3 + $0x6d4] sm:$0xf] }
  0xe3   : > { %2045 = vmatpush.bf16.msra.mxu2 %v3107_v53  ;;  %2018 = vmatpush.bf16.msra.mxu0 %v2563_v0  ;;  %v2660_v53 = vld [vmem:[#allocation3 + $0xf0] sm:$0xf0] }
  0xe4   : > { %v3428_v60 = vld [vmem:[#allocation3 + $0x6f0] sm:$0xf0]  ;;  %v2663_v61 = vor.u32 %v3617_v52, %v2660_v53 }
  0xe5   : > { %2059 = vmatpush.bf16.msra.mxu3 %v3363_v57  ;;  %2032 = vmatpush.bf16.msra.mxu1 %v2819_v4  ;;  %v3745_v57 = vld [vmem:[#allocation3 + $0x4d4] sm:$0xf]  ;;  %v3431_v3 = vor.u32 %v3809_v59, %v3428_v60 }
  0xe6   : > { %2019 = vmatmul.bf16.vlgmr.msra.gmra.mxu0 %v4268_v27  ;;  %v3175_v63 = vor.u32 %v3745_v57, %v3172_v58  ;;  %v3609_v0 = vld [vmem:[#allocation3 + $0x94] sm:$0xf]  ;;  %v2795_v58 = vor.u32 %v3654_v45, %v2794_v44  ;;  %v2666_v44 = vld [vmem:[#allocation3 + $0xd8] sm:$0xf] }
  0xe7   : > { %2046 = vmatpush.bf16.msra.mxu2 %v3075_v5  ;;  %2067 = vmatpush.bf16.msrb.mxu0 %v2791_v10  ;;  %v2628_v1 = vld [vmem:[#allocation3 + $0xb0] sm:$0xf0]  ;;  %v3622_v45 = vld [vmem:[#allocation3 + $0xf4] sm:$0xf0] }
  0xe8   : > { %2033 = vmatmul.bf16.vlgmr.msra.gmra.mxu1 %v4272_v34  ;;  %v3673_v2 = vld [vmem:[#allocation3 + $0x294] sm:$0xf]  ;;  %v2631_v10 = vor.u32 %v3609_v0, %v2628_v1  ;;  %v3646_v0 = vld [vmem:[#allocation3 + $0x1b4] sm:$0xf0] }
  0xe9   : > { %2060 = vmatpush.bf16.msra.mxu3 %v3331_v8  ;;  %2081 = vmatpush.bf16.msrb.mxu1 %v3047_v11  ;;  %v2884_v4 = vld [vmem:[#allocation3 + $0x2b0] sm:$0xf0]  ;;  %v1796_v11 = vpop.f32.mrf.mxu0  ;;  %v1810_v18 = vpop.f32.mrf.mxu1  ;;  %v3018_v1 = vld [vmem:[#allocation3 + $0x398] sm:$0xf] }
  0xea   : > { %2047 = vmatmul.bf16.vlgmr.msra.gmra.mxu2 %v4258_v9  ;;  %v3737_v5 = vld [vmem:[#allocation3 + $0x494] sm:$0xf] }
  0xeb   : > { %2095 = vmatpush.bf16.msrb.mxu2 %v3303_v12  ;;  %2068 = vmatpush.bf16.msrb.mxu0 %v2759_v23  ;;  %v3140_v6 = vld [vmem:[#allocation3 + $0x4b0] sm:$0xf0]  ;;  %v2887_v12 = vor.u32 %v3673_v2, %v2884_v4  ;;  %v1811_v23 = vadd.f32 %v1810_v18, %v1796_v11  ;;  %v3710_v4 = vld [vmem:[#allocation3 + $0x3b4] sm:$0xf0] }
  0xec   : > { %2061 = vmatmul.bf16.vlgmr.msra.gmra.mxu3 %v4262_v16  ;;  %v3801_v7 = vld [vmem:[#allocation3 + $0x694] sm:$0xf]  ;;  %v3143_v13 = vor.u32 %v3737_v5, %v3140_v6  ;;  %v3274_v5 = vld [vmem:[#allocation3 + $0x598] sm:$0xf] }
  0xed   : > { %2109 = vmatpush.bf16.msrb.mxu3 %v3559_v17  ;;  %2082 = vmatpush.bf16.msrb.mxu1 %v3015_v24  ;;  %v3396_v8 = vld [vmem:[#allocation3 + $0x6b0] sm:$0xf0]  ;;  %v1824_v24 = vpop.f32.mrf.mxu2  ;;  %v3774_v6 = vld [vmem:[#allocation3 + $0x5b4] sm:$0xf0] }
  0xee   : > { %v3601_v14 = vld [vmem:[#allocation3 + $0x54] sm:$0xf]  ;;  %v3399_v19 = vor.u32 %v3801_v7, %v3396_v8  ;;  %v1825_v32 = vadd.f32 %v1824_v24, %v1811_v23  ;;  %v3530_v8 = vld [vmem:[#allocation3 + $0x798] sm:$0xf] }
  0xef   : > { %2096 = vmatpush.bf16.msrb.mxu2 %v3271_v25  ;;  %2069 = vmatpush.bf16.msrb.mxu0 %v2727_v37  ;;  %v2596_v15 = vld [vmem:[#allocation3 + $0x70] sm:$0xf0]  ;;  %v1838_v28 = vpop.f32.mrf.mxu3  ;;  %v2986_v18 = vld [vmem:[#allocation3 + $0x358] sm:$0xf] }
  0xf0   : > { %v3665_v17 = vld [vmem:[#allocation3 + $0x254] sm:$0xf]  ;;  %v2599_v29 = vor.u32 %v3601_v14, %v2596_v15  ;;  %v3275_v14 = vor.u32 %v3774_v6, %v3274_v5  ;;  %v2730_v15 = vld [vmem:[#allocation3 + $0x158] sm:$0xf] }
  0xf1   : > { %2110 = vmatpush.bf16.msrb.mxu3 %v3527_v30  ;;  %2083 = vmatpush.bf16.msrb.mxu1 %v2983_v38  ;;  %v2852_v20 = vld [vmem:[#allocation3 + $0x270] sm:$0xf0]  ;;  %v1812_v56 = vpop.f32.mrf.mxu1  ;;  %v3498_v23 = vld [vmem:[#allocation3 + $0x758] sm:$0xf] }
  0xf2   : > { %v3729_v21 = vld [vmem:[#allocation3 + $0x454] sm:$0xf]  ;;  %v2855_v33 = vor.u32 %v3665_v17, %v2852_v20  ;;  %v3638_v17 = vld [vmem:[#allocation3 + $0x174] sm:$0xf0] }
  0xf3   : > { %2097 = vmatpush.bf16.msrb.mxu2 %v3239_v39  ;;  %2070 = vmatpush.bf16.msrb.mxu0 %v2695_v49  ;;  %v3108_v22 = vld [vmem:[#allocation3 + $0x470] sm:$0xf0]  ;;  %v3306_v49 = vld [vmem:[#allocation3 + $0x5d8] sm:$0xf] }
  0xf4   : > { %v3793_v25 = vld [vmem:[#allocation3 + $0x654] sm:$0xf]  ;;  %v3111_v35 = vor.u32 %v3729_v21, %v3108_v22  ;;  %v3702_v20 = vld [vmem:[#allocation3 + $0x374] sm:$0xf0] }
  0xf5   : > { %2111 = vmatpush.bf16.msrb.mxu3 %v3495_v43  ;;  %2084 = vmatpush.bf16.msrb.mxu1 %v2951_v50  ;;  %v3364_v26 = vld [vmem:[#allocation3 + $0x670] sm:$0xf0]  ;;  %v4292_v43 = vadd.f32 %v1838_v28, %v1825_v32  ;;  %v3782_v50 = vld [vmem:[#allocation3 + $0x5f4] sm:$0xf0]  ;;  %v1826_v60 = vpop.f32.mrf.mxu2 }
  0xf6   : > { %v3593_v30 = vld [vmem:[#allocation3 + $0x14] sm:$0xf]  ;;  %v3367_v39 = vor.u32 %v3793_v25, %v3364_v26  ;;  %v3242_v21 = vld [vmem:[#allocation3 + $0x558] sm:$0xf]  ;;  %v2731_v25 = vor.u32 %v3638_v17, %v2730_v15  ;;  %v2987_v26 = vor.u32 %v3702_v20, %v2986_v18 }
  0xf7   : > { %2098 = vmatpush.bf16.msrb.mxu2 %v3207_v51  ;;  %2071 = vmatpush.bf16.msrb.mxu0 %v2663_v61  ;;  %v2564_v31 = vld [vmem:[#allocation3 + $0x30] sm:$0xf0]  ;;  %v1798_v51 = vpop.f32.mrf.mxu0  ;;  %v3051_v61 = vor.u32 %v3718_v48, %v3050_v46  ;;  %v1840_v2 = vpop.f32.mrf.mxu3  ;;  %v3766_v22 = vld [vmem:[#allocation3 + $0x574] sm:$0xf0] }
  0xf8   : > { %v3657_v36 = vld [vmem:[#allocation3 + $0x214] sm:$0xf]  ;;  %v2567_v47 = vor.u32 %v3593_v30, %v2564_v31  ;;  %v1813_v59 = vadd.f32 %v1812_v56, %v1798_v51  ;;  %v3830_v24 = vld [vmem:[#allocation3 + $0x774] sm:$0xf0]  ;;  %v3243_v28 = vor.u32 %v3766_v22, %v3242_v21 }
  0xf9   : > { %2112 = vmatpush.bf16.msrb.mxu3 %v3463_v55  ;;  %2085 = vmatpush.bf16.msrb.mxu1 %v2919_v62  ;;  %v2820_v37 = vld [vmem:[#allocation3 + $0x230] sm:$0xf0]  ;;  %v3846_v55 = vld [vmem:[#allocation3 + $0x7f4] sm:$0xf0]  ;;  %v3307_v62 = vor.u32 %v3782_v50, %v3306_v49  ;;  %v3499_v32 = vor.u32 %v3830_v24, %v3498_v23 }
  0xfa   : > { %v3721_v38 = vld [vmem:[#allocation3 + $0x414] sm:$0xf]  ;;  %v2823_v52 = vor.u32 %v3657_v36, %v2820_v37  ;;  %v1827_v7 = vadd.f32 %v1826_v60, %v1813_v59  ;;  %v3630_v30 = vld [vmem:[#allocation3 + $0x134] sm:$0xf0] }
  0xfb   : > { %2099 = vmatpush.bf16.msrb.mxu2 %v3175_v63  ;;  %2072 = vmatpush.bf16.msrb.mxu0 %v2631_v10  ;;  %v3076_v40 = vld [vmem:[#allocation3 + $0x430] sm:$0xf0]  ;;  %v2762_v63 = vld [vmem:[#allocation3 + $0x198] sm:$0xf] }
  0xfc   : > { %v3785_v41 = vld [vmem:[#allocation3 + $0x614] sm:$0xf]  ;;  %v3079_v53 = vor.u32 %v3721_v38, %v3076_v40  ;;  %v3838_v10 = vld [vmem:[#allocation3 + $0x7b4] sm:$0xf0]  ;;  %v2763_v11 = vor.u32 %v3646_v0, %v2762_v63 }
  0xfd   : > { %2113 = vmatpush.bf16.msrb.mxu3 %v3431_v3  ;;  %2086 = vmatpush.bf16.msrb.mxu1 %v2887_v12  ;;  %v3332_v42 = vld [vmem:[#allocation3 + $0x630] sm:$0xf0]  ;;  %v3563_v3 = vor.u32 %v3846_v55, %v3562_v54  ;;  %v4294_v12 = vadd.f32 %v1840_v2, %v1827_v7  ;;  %v2954_v31 = vld [vmem:[#allocation3 + $0x318] sm:$0xf]  ;;  %v2667_v55 = vor.u32 %v3622_v45, %v2666_v44  ;;  %v3714_v44 = vld [vmem:[#allocation3 + $0x3dc] sm:$0xf] }
  0xfe   : > { %v3335_v57 = vor.u32 %v3785_v41, %v3332_v42  ;;  %v3758_v36 = vld [vmem:[#allocation3 + $0x534] sm:$0xf0] }
  0xff   : > { %2100 = vmatpush.bf16.msrb.mxu2 %v3143_v13  ;;  %2073 = vmatpush.bf16.msrb.mxu0 %v2599_v29  ;;  %v3019_v13 = vor.u32 %v3710_v4, %v3018_v1  ;;  %v2698_v29 = vld [vmem:[#allocation3 + $0x118] sm:$0xf] }
 0x100   : > { %v3466_v37 = vld [vmem:[#allocation3 + $0x718] sm:$0xf] }
 0x101   : > { %2114 = vmatpush.bf16.msrb.mxu3 %v3399_v19  ;;  %2087 = vmatpush.bf16.msrb.mxu1 %v2855_v33  ;;  %v3531_v19 = vor.u32 %v3838_v10, %v3530_v8  ;;  %v3694_v33 = vld [vmem:[#allocation3 + $0x334] sm:$0xf0] }
 0x102   : > { %v3822_v38 = vld [vmem:[#allocation3 + $0x734] sm:$0xf0]  ;;  %v2955_v41 = vor.u32 %v3694_v33, %v2954_v31 }
 0x103   : > { %2101 = vmatpush.bf16.msrb.mxu2 %v3111_v35  ;;  %2074 = vmatpush.bf16.msrb.mxu0 %v2567_v47  ;;  %v3210_v35 = vld [vmem:[#allocation3 + $0x518] sm:$0xf]  ;;  %v1852_v40 = vpop.f32.mrf.mxu0  ;;  %v3467_v48 = vor.u32 %v3822_v38, %v3466_v37 }
 0x104   : > { %v3211_v42 = vor.u32 %v3758_v36, %v3210_v35  ;;  %v2922_v46 = vld [vmem:[#allocation3 + $0x2d8] sm:$0xf] }
 0x105   : > { %2115 = vmatpush.bf16.msrb.mxu3 %v3367_v39  ;;  %2088 = vmatpush.bf16.msrb.mxu1 %v2823_v52  ;;  %v2699_v39 = vor.u32 %v3630_v30, %v2698_v29  ;;  %v1866_v47 = vpop.f32.mrf.mxu1  ;;  %v3686_v49 = vld [vmem:[#allocation3 + $0x2f4] sm:$0xf0] }
 0x106   : > { %2075 = vmatmul.bf16.vlgmr.msrb.gmra.mxu0 %v4268_v27  ;;  %v3178_v50 = vld [vmem:[#allocation3 + $0x4d8] sm:$0xf]  ;;  %v1867_v52 = vadd.f32 %v1866_v47, %v1852_v40  ;;  %v2923_v56 = vor.u32 %v3686_v49, %v2922_v46  ;;  %v3052_v47 = vld [vmem:[#allocation3 + $0x3f8] sm:$0xf0] }
 0x107   : > { %2102 = vmatpush.bf16.msrb.mxu2 %v3079_v53  ;;  %2123 = vmatpush.bf16.msra.mxu0 %v2795_v58  ;;  %v3750_v51 = vld [vmem:[#allocation3 + $0x4f4] sm:$0xf0]  ;;  %v3308_v49 = vld [vmem:[#allocation3 + $0x5f8] sm:$0xf0] }
 0x108   : > { %2089 = vmatmul.bf16.vlgmr.msrb.gmra.mxu1 %v4272_v34  ;;  %v3434_v53 = vld [vmem:[#allocation3 + $0x6d8] sm:$0xf] }
 0x109   : > { %2116 = vmatpush.bf16.msrb.mxu3 %v3335_v57  ;;  %2137 = vmatpush.bf16.msra.mxu1 %v3051_v61  ;;  %v3814_v54 = vld [vmem:[#allocation3 + $0x6f4] sm:$0xf0]  ;;  %v3179_v57 = vor.u32 %v3750_v51, %v3178_v50 }
 0x10a   : > { %2103 = vmatmul.bf16.vlgmr.msrb.gmra.mxu2 %v4258_v9  ;;  %v2634_v58 = vld [vmem:[#allocation3 + $0x98] sm:$0xf] }
 0x10b   : > { %2151 = vmatpush.bf16.msra.mxu2 %v3307_v62  ;;  %2124 = vmatpush.bf16.msra.mxu0 %v2763_v11  ;;  %v3614_v59 = vld [vmem:[#allocation3 + $0xb4] sm:$0xf0]  ;;  %v3435_v62 = vor.u32 %v3814_v54, %v3434_v53  ;;  %v1854_v15 = vpop.f32.mrf.mxu0  ;;  %v3842_v53 = vld [vmem:[#allocation3 + $0x7dc] sm:$0xf] }
 0x10c   : > { %2117 = vmatmul.bf16.vlgmr.msrb.gmra.mxu3 %v4262_v16  ;;  %v2890_v60 = vld [vmem:[#allocation3 + $0x298] sm:$0xf]  ;;  %v2635_v6 = vor.u32 %v3614_v59, %v2634_v58  ;;  %v3564_v54 = vld [vmem:[#allocation3 + $0x7f8] sm:$0xf0] }
 0x10d   : > { %2165 = vmatpush.bf16.msra.mxu3 %v3563_v3  ;;  %2138 = vmatpush.bf16.msra.mxu1 %v3019_v13  ;;  %v1880_v61 = vpop.f32.mrf.mxu2  ;;  %v3678_v63 = vld [vmem:[#allocation3 + $0x2b4] sm:$0xf0]  ;;  %v1868_v17 = vpop.f32.mrf.mxu1  ;;  %v3642_v59 = vld [vmem:[#allocation3 + $0x19c] sm:$0xf] }
 0x10e   : > { %v3146_v0 = vld [vmem:[#allocation3 + $0x498] sm:$0xf]  ;;  %v1881_v2 = vadd.f32 %v1880_v61, %v1867_v52  ;;  %v2891_v8 = vor.u32 %v3678_v63, %v2890_v60  ;;  %v1869_v22 = vadd.f32 %v1868_v17, %v1854_v15  ;;  %v2764_v60 = vld [vmem:[#allocation3 + $0x1b8] sm:$0xf0] }
 0x10f   : > { %2152 = vmatpush.bf16.msra.mxu2 %v3275_v14  ;;  %2125 = vmatpush.bf16.msra.mxu0 %v2731_v25  ;;  %v3742_v1 = vld [vmem:[#allocation3 + $0x4b4] sm:$0xf0]  ;;  %v1894_v3 = vpop.f32.mrf.mxu3  ;;  %v3706_v61 = vld [vmem:[#allocation3 + $0x39c] sm:$0xf] }
 0x110   : > { %v3402_v4 = vld [vmem:[#allocation3 + $0x698] sm:$0xf]  ;;  %v4300_v7 = vadd.f32 %v1894_v3, %v1881_v2  ;;  %v3147_v10 = vor.u32 %v3742_v1, %v3146_v0  ;;  %v3020_v63 = vld [vmem:[#allocation3 + $0x3b8] sm:$0xf0] }
 0x111   : > { %2166 = vmatpush.bf16.msra.mxu3 %v3531_v19  ;;  %2139 = vmatpush.bf16.msra.mxu1 %v2987_v26  ;;  %v3806_v5 = vld [vmem:[#allocation3 + $0x6b4] sm:$0xf0]  ;;  %v3770_v0 = vld [vmem:[#allocation3 + $0x59c] sm:$0xf] }
 0x112   : > { %v2602_v11 = vld [vmem:[#allocation3 + $0x58] sm:$0xf]  ;;  %v3403_v18 = vor.u32 %v3806_v5, %v3402_v4  ;;  %v3276_v1 = vld [vmem:[#allocation3 + $0x5b8] sm:$0xf0]  ;;  %v2767_v4 = vor.u32 %v3642_v59, %v2764_v60  ;;  %v3023_v5 = vor.u32 %v3706_v61, %v3020_v63 }
 0x113   : > { %2153 = vmatpush.bf16.msra.mxu2 %v3243_v28  ;;  %2126 = vmatpush.bf16.msra.mxu0 %v2699_v39  ;;  %v3606_v13 = vld [vmem:[#allocation3 + $0x74] sm:$0xf0]  ;;  %v3834_v2 = vld [vmem:[#allocation3 + $0x79c] sm:$0xf] }
 0x114   : > { %v2858_v14 = vld [vmem:[#allocation3 + $0x258] sm:$0xf]  ;;  %v2603_v25 = vor.u32 %v3606_v13, %v2602_v11  ;;  %v3532_v3 = vld [vmem:[#allocation3 + $0x7b8] sm:$0xf0] }
 0x115   : > { %2167 = vmatpush.bf16.msra.mxu3 %v3499_v32  ;;  %2140 = vmatpush.bf16.msra.mxu1 %v2955_v41  ;;  %v3670_v19 = vld [vmem:[#allocation3 + $0x274] sm:$0xf0]  ;;  %v1882_v35 = vpop.f32.mrf.mxu2  ;;  %v3650_v41 = vld [vmem:[#allocation3 + $0x1dc] sm:$0xf]  ;;  %v3535_v13 = vor.u32 %v3834_v2, %v3532_v3 }
 0x116   : > { %v3114_v20 = vld [vmem:[#allocation3 + $0x458] sm:$0xf]  ;;  %v2859_v29 = vor.u32 %v3670_v19, %v2858_v14  ;;  %v1883_v40 = vadd.f32 %v1882_v35, %v1869_v22  ;;  %v3698_v11 = vld [vmem:[#allocation3 + $0x35c] sm:$0xf] }
 0x117   : > { %2154 = vmatpush.bf16.msra.mxu2 %v3211_v42  ;;  %2127 = vmatpush.bf16.msra.mxu0 %v2667_v55  ;;  %v3734_v21 = vld [vmem:[#allocation3 + $0x474] sm:$0xf0]  ;;  %v2796_v42 = vld [vmem:[#allocation3 + $0x1f8] sm:$0xf0]  ;;  %v1896_v45 = vpop.f32.mrf.mxu3 }
 0x118   : > { %v3370_v23 = vld [vmem:[#allocation3 + $0x658] sm:$0xf]  ;;  %v3115_v30 = vor.u32 %v3734_v21, %v3114_v20  ;;  %v4302_v50 = vadd.f32 %v1896_v45, %v1883_v40  ;;  %v2988_v14 = vld [vmem:[#allocation3 + $0x378] sm:$0xf0] }
 0x119   : > { %2168 = vmatpush.bf16.msra.mxu3 %v3467_v48  ;;  %2141 = vmatpush.bf16.msra.mxu1 %v2923_v56  ;;  %v3798_v24 = vld [vmem:[#allocation3 + $0x674] sm:$0xf0]  ;;  %v3778_v48 = vld [vmem:[#allocation3 + $0x5dc] sm:$0xf]  ;;  %v2799_v56 = vor.u32 %v3650_v41, %v2796_v42  ;;  %v2991_v21 = vor.u32 %v3698_v11, %v2988_v14  ;;  %v2239_v14 = vlaneseq }
 0x11a   : > { %v2570_v26 = vld [vmem:[#allocation3 + $0x18] sm:$0xf]  ;;  %v3371_v36 = vor.u32 %v3798_v24, %v3370_v23  ;;  %v3311_v58 = vor.u32 %v3778_v48, %v3308_v49  ;;  %v3762_v15 = vld [vmem:[#allocation3 + $0x55c] sm:$0xf] }
 0x11b   : > { %2155 = vmatpush.bf16.msra.mxu2 %v3179_v57  ;;  %2128 = vmatpush.bf16.msra.mxu0 %v2635_v6  ;;  %v3598_v28 = vld [vmem:[#allocation3 + $0x34] sm:$0xf0]  ;;  %v3055_v57 = vor.u32 %v3714_v44, %v3052_v47  ;;  %v3279_v6 = vor.u32 %v3770_v0, %v3276_v1  ;;  %v3244_v17 = vld [vmem:[#allocation3 + $0x578] sm:$0xf0] }
 0x11c   : > { %v2826_v31 = vld [vmem:[#allocation3 + $0x218] sm:$0xf]  ;;  %v2571_v46 = vor.u32 %v3598_v28, %v2570_v26  ;;  %v3500_v19 = vld [vmem:[#allocation3 + $0x778] sm:$0xf0]  ;;  %v3247_v22 = vor.u32 %v3762_v15, %v3244_v17 }
 0x11d   : > { %2169 = vmatpush.bf16.msra.mxu3 %v3435_v62  ;;  %2142 = vmatpush.bf16.msra.mxu1 %v2891_v8  ;;  %v3662_v32 = vld [vmem:[#allocation3 + $0x234] sm:$0xf0]  ;;  %v3567_v62 = vor.u32 %v3842_v53, %v3564_v54  ;;  %v3634_v8 = vld [vmem:[#allocation3 + $0x15c] sm:$0xf] }
 0x11e   : > { %v3082_v33 = vld [vmem:[#allocation3 + $0x418] sm:$0xf]  ;;  %v2827_v51 = vor.u32 %v3662_v32, %v2826_v31  ;;  %v3626_v23 = vld [vmem:[#allocation3 + $0x11c] sm:$0xf] }
 0x11f   : > { %2156 = vmatpush.bf16.msra.mxu2 %v3147_v10  ;;  %v3726_v37 = vld [vmem:[#allocation3 + $0x434] sm:$0xf0]  ;;  %2129 = vmatpush.bf16.msra.mxu0 %v2603_v25  ;;  %v2732_v10 = vld [vmem:[#allocation3 + $0x178] sm:$0xf0] }
 0x120   : > { %v3338_v38 = vld [vmem:[#allocation3 + $0x618] sm:$0xf]  ;;  %v3083_v52 = vor.u32 %v3726_v37, %v3082_v33  ;;  %v2735_v20 = vor.u32 %v3634_v8, %v2732_v10  ;;  %v2700_v24 = vld [vmem:[#allocation3 + $0x138] sm:$0xf0] }
 0x121   : > { %2170 = vmatpush.bf16.msra.mxu3 %v3403_v18  ;;  %v3790_v39 = vld [vmem:[#allocation3 + $0x634] sm:$0xf0]  ;;  %2143 = vmatpush.bf16.msra.mxu1 %v2859_v29  ;;  %v3826_v18 = vld [vmem:[#allocation3 + $0x75c] sm:$0xf]  ;;  %v2703_v33 = vor.u32 %v3626_v23, %v2700_v24 }
 0x122   : > { %v3339_v55 = vor.u32 %v3790_v39, %v3338_v38  ;;  %v3690_v25 = vld [vmem:[#allocation3 + $0x31c] sm:$0xf]  ;;  %v3503_v26 = vor.u32 %v3826_v18, %v3500_v19 }
 0x123   : > { %2157 = vmatpush.bf16.msra.mxu2 %v3115_v30  ;;  %2130 = vmatpush.bf16.msra.mxu0 %v2571_v46  ;;  %v2956_v28 = vld [vmem:[#allocation3 + $0x338] sm:$0xf0]  ;;  %v1908_v35 = vpop.f32.mrf.mxu0 }
 0x124   : > { %v3754_v29 = vld [vmem:[#allocation3 + $0x51c] sm:$0xf] }
 0x125   : > { %2171 = vmatpush.bf16.msra.mxu3 %v3371_v36  ;;  %2144 = vmatpush.bf16.msra.mxu1 %v2827_v51  ;;  %v3212_v30 = vld [vmem:[#allocation3 + $0x538] sm:$0xf0]  ;;  %v2959_v36 = vor.u32 %v3690_v25, %v2956_v28  ;;  %v1922_v38 = vpop.f32.mrf.mxu1 }
 0x126   : > { %2131 = vmatmul.bf16.vlgmr.msra.gmra.mxu0 %v4268_v27  ;;  %v3818_v31 = vld [vmem:[#allocation3 + $0x71c] sm:$0xf]  ;;  %v3215_v37 = vor.u32 %v3754_v29, %v3212_v30  ;;  %v1923_v44 = vadd.f32 %v1922_v38, %v1908_v35  ;;  %v4308_v29 = vshrl.u32 %v2239_v14, 7 }
 0x127   : > { %2158 = vmatpush.bf16.msra.mxu2 %v3083_v52  ;;  %2179 = vmatpush.bf16.msrb.mxu0 %v2799_v56  ;;  %v3468_v32 = vld [vmem:[#allocation3 + $0x738] sm:$0xf0] }
 0x128   : > { %2145 = vmatmul.bf16.vlgmr.msra.gmra.mxu1 %v4272_v34  ;;  %v3618_v39 = vld [vmem:[#allocation3 + $0xdc] sm:$0xf]  ;;  %v3471_v42 = vor.u32 %v3818_v31, %v3468_v32  ;;  %vm2241_vm0 = vcmp.lt.s32.totalorder %v4308_v29, 1  ;;  %vm2274_vm1 = vcmp.ge.s32.totalorder %v4308_v29, 1  ;;  %vm2250_vm2 = vcmp.lt.s32.totalorder %v4308_v29, 2 }
 0x129   : > { %2172 = vmatpush.bf16.msra.mxu3 %v3339_v55  ;;  %2193 = vmatpush.bf16.msrb.mxu1 %v3055_v57  ;;  %v2668_v40 = vld [vmem:[#allocation3 + $0xf8] sm:$0xf0]  ;;  %vm2281_vm3 = vcmp.ge.s32.totalorder %v4308_v29, 2  ;;  %vm2259_vm4 = vcmp.lt.s32.totalorder %v4308_v29, 3  ;;  %vm2288_vm5 = vcmp.ge.s32.totalorder %v4308_v29, 3 }
 0x12a   : > { %2159 = vmatmul.bf16.vlgmr.msra.gmra.mxu2 %v4258_v9  ;;  %v3682_v41 = vld [vmem:[#allocation3 + $0x2dc] sm:$0xf]  ;;  %v2671_v51 = vor.u32 %v3618_v39, %v2668_v40 }
 0x12b   : > { %2207 = vmatpush.bf16.msrb.mxu2 %v3311_v58  ;;  %2180 = vmatpush.bf16.msrb.mxu0 %v2767_v4  ;;  %v2924_v45 = vld [vmem:[#allocation3 + $0x2f8] sm:$0xf0]  ;;  %v1910_v4 = vpop.f32.mrf.mxu0 }
 0x12c   : > { %2173 = vmatmul.bf16.vlgmr.msra.gmra.mxu3 %v4262_v16  ;;  %v3746_v46 = vld [vmem:[#allocation3 + $0x4dc] sm:$0xf]  ;;  %v2927_v52 = vor.u32 %v3682_v41, %v2924_v45  ;;  %v225_v45 = vld [vmem:[#allocation2] sm:$0xff] }
 0x12d   : > { %2221 = vmatpush.bf16.msrb.mxu3 %v3567_v62  ;;  %2194 = vmatpush.bf16.msrb.mxu1 %v3023_v5  ;;  %v3180_v47 = vld [vmem:[#allocation3 + $0x4f8] sm:$0xf0]  ;;  %v1936_v54 = vpop.f32.mrf.mxu2  ;;  %v1924_v8 = vpop.f32.mrf.mxu1 }
 0x12e   : > { %v3810_v48 = vld [vmem:[#allocation3 + $0x6dc] sm:$0xf]  ;;  %v3183_v53 = vor.u32 %v3746_v46, %v3180_v47  ;;  %v1937_v59 = vadd.f32 %v1936_v54, %v1923_v44  ;;  %v1925_v17 = vadd.f32 %v1924_v8, %v1910_v4 }
 0x12f   : > { %2208 = vmatpush.bf16.msrb.mxu2 %v3279_v6  ;;  %2181 = vmatpush.bf16.msrb.mxu0 %v2735_v20  ;;  %v3436_v49 = vld [vmem:[#allocation3 + $0x6f8] sm:$0xf0]  ;;  %v1950_v60 = vpop.f32.mrf.mxu3 }
 0x130   : > { %v3610_v55 = vld [vmem:[#allocation3 + $0x9c] sm:$0xf]  ;;  %v3439_v58 = vor.u32 %v3810_v48, %v3436_v49  ;;  %v1951_v2 = vadd.f32 %v1950_v60, %v1937_v59 }
 0x131   : > { %2222 = vmatpush.bf16.msrb.mxu3 %v3535_v13  ;;  %2195 = vmatpush.bf16.msrb.mxu1 %v2991_v21  ;;  %v2636_v56 = vld [vmem:[#allocation3 + $0xb8] sm:$0xf0] }
 0x132   : > { %v3674_v57 = vld [vmem:[#allocation3 + $0x29c] sm:$0xf]  ;;  %v2639_v3 = vor.u32 %v3610_v55, %v2636_v56  ;;  %v2235_v41 = vrot.slane %v1951_v2, 7 }
 0x133   : > { %2209 = vmatpush.bf16.msrb.mxu2 %v3247_v22  ;;  %2182 = vmatpush.bf16.msrb.mxu0 %v2703_v33  ;;  %v2892_v61 = vld [vmem:[#allocation3 + $0x2b8] sm:$0xf0] }
 0x134   : > { %v3738_v62 = vld [vmem:[#allocation3 + $0x49c] sm:$0xf]  ;;  %v2895_v5 = vor.u32 %v3674_v57, %v2892_v61 }
 0x135   : > { %2223 = vmatpush.bf16.msrb.mxu3 %v3503_v26  ;;  %2196 = vmatpush.bf16.msrb.mxu1 %v2959_v36  ;;  %v3148_v63 = vld [vmem:[#allocation3 + $0x4b8] sm:$0xf0]  ;;  %v1938_v28 = vpop.f32.mrf.mxu2 }
 0x136   : > { %v3802_v0 = vld [vmem:[#allocation3 + $0x69c] sm:$0xf]  ;;  %v3151_v6 = vor.u32 %v3738_v62, %v3148_v63  ;;  %v1939_v33 = vadd.f32 %v1938_v28, %v1925_v17 }
 0x137   : > { %2210 = vmatpush.bf16.msrb.mxu2 %v3215_v37  ;;  %v3404_v1 = vld [vmem:[#allocation3 + $0x6b8] sm:$0xf0]  ;;  %2183 = vmatpush.bf16.msrb.mxu0 %v2671_v51  ;;  %v1952_v35 = vpop.f32.mrf.mxu3  ;;  %v2272_v51 = vadd.f32 %v4292_v43, %v225_v45 }
 0x138   : > { %v3602_v10 = vld [vmem:[#allocation3 + $0x5c] sm:$0xf]  ;;  %v3407_v15 = vor.u32 %v3802_v0, %v3404_v1 }
 0x139   : > { %2224 = vmatpush.bf16.msrb.mxu3 %v3471_v42  ;;  %2197 = vmatpush.bf16.msrb.mxu1 %v2927_v52  ;;  %v2604_v11 = vld [vmem:[#allocation3 + $0x78] sm:$0xf0]  ;;  %v1953_v42 = vadd.f32 %v1952_v35, %v1939_v33 }
 0x13a   : > { %v3666_v13 = vld [vmem:[#allocation3 + $0x25c] sm:$0xf]  ;;  %v2607_v23 = vor.u32 %v3602_v10, %v2604_v11 }
 0x13b   : > { %2211 = vmatpush.bf16.msrb.mxu2 %v3183_v53  ;;  %v2860_v18 = vld [vmem:[#allocation3 + $0x278] sm:$0xf0]  ;;  %2184 = vmatpush.bf16.msrb.mxu0 %v2639_v3  ;;  %v2237_v48 = vrot.slane %v1953_v42, 7 }
 0x13c   : > { %v3730_v19 = vld [vmem:[#allocation3 + $0x45c] sm:$0xf]  ;;  %v2863_v25 = vor.u32 %v3666_v13, %v2860_v18 }
 0x13d   : > { %2225 = vmatpush.bf16.msrb.mxu3 %v3439_v58  ;;  %v3116_v20 = vld [vmem:[#allocation3 + $0x478] sm:$0xf0]  ;;  %2198 = vmatpush.bf16.msrb.mxu1 %v2895_v5  ;;  %v2242_v52 = vsel %vm2241_vm0, %v2235_v41, %v2237_v48  ;;  %v4317_v53 = vsel %vm2241_vm0, %v2237_v48, %v2235_v41 }
 0x13e   : > { %v3794_v21 = vld [vmem:[#allocation3 + $0x65c] sm:$0xf]  ;;  %v3119_v26 = vor.u32 %v3730_v19, %v3116_v20  ;;  %v4320_v54 = vadd.f32 %v2242_v52, %v4294_v12  ;;  %v2277_v55 = vsel %vm2274_vm1, %v4317_v53, 0.0 }
 0x13f   : > { %v3372_v22 = vld [vmem:[#allocation3 + $0x678] sm:$0xf0]  ;;  %2212 = vmatpush.bf16.msrb.mxu2 %v3151_v6  ;;  %2185 = vmatpush.bf16.msrb.mxu0 %v2607_v23  ;;  %v4325_v56 = vadd.f32 %v2277_v55, %v2272_v51 }
 0x140   : > { %v3594_v24 = vld [vmem:[#allocation3 + $0x1c] sm:$0xf]  ;;  %v3375_v32 = vor.u32 %v3794_v21, %v3372_v22 }
 0x141   : > { %v2572_v30 = vld [vmem:[#allocation3 + $0x38] sm:$0xf0]  ;;  %2226 = vmatpush.bf16.msrb.mxu3 %v3407_v15  ;;  %2199 = vmatpush.bf16.msrb.mxu1 %v2863_v25 }
 0x142   : > { %v3658_v31 = vld [vmem:[#allocation3 + $0x21c] sm:$0xf]  ;;  %v2575_v44 = vor.u32 %v3594_v24, %v2572_v30 }
 0x143   : > { %v2828_v36 = vld [vmem:[#allocation3 + $0x238] sm:$0xf0]  ;;  %2213 = vmatpush.bf16.msrb.mxu2 %v3119_v26  ;;  %v1964_v43 = vpop.f32.mrf.mxu0 }
 0x144   : > { %v3722_v37 = vld [vmem:[#allocation3 + $0x41c] sm:$0xf]  ;;  %v2831_v46 = vor.u32 %v3658_v31, %v2828_v36  ;;  %2186 = vmatpush.bf16.msrb.mxu0 %v2575_v44 }
 0x145   : > { %v3084_v38 = vld [vmem:[#allocation3 + $0x438] sm:$0xf0]  ;;  %2227 = vmatpush.bf16.msrb.mxu3 %v3375_v32  ;;  %v1978_v12 = vpop.f32.mrf.mxu1 }
 0x146   : > { %v3786_v39 = vld [vmem:[#allocation3 + $0x61c] sm:$0xf]  ;;  %v3087_v47 = vor.u32 %v3722_v37, %v3084_v38  ;;  %2200 = vmatpush.bf16.msrb.mxu1 %v2831_v46  ;;  %v1979_v57 = vadd.f32 %v1978_v12, %v1964_v43 }
 0x147   : > { %v3340_v40 = vld [vmem:[#allocation3 + $0x638] sm:$0xf0]  ;;  %2187 = vmatmul.bf16.vlgmr.msrb.gmra.mxu0 %v4268_v27 }
 0x148   : > { %v3343_v49 = vor.u32 %v3786_v39, %v3340_v40  ;;  %2214 = vmatpush.bf16.msrb.mxu2 %v3087_v47 }
 0x149   : > { %2201 = vmatmul.bf16.vlgmr.msrb.gmra.mxu1 %v4272_v34  ;;  %v226_v34 = vld [vmem:[#allocation2 + $0x8] sm:$0xff] }
 0x14a   : > { %2228 = vmatpush.bf16.msrb.mxu3 %v3343_v49 }
 0x14b   : > { %2215 = vmatmul.bf16.vlgmr.msrb.gmra.mxu2 %v4258_v9  ;;  %v1966_v62 = vpop.f32.mrf.mxu0  ;;  %v2273_v9 = vadd.f32 %v4300_v7, %v226_v34 }
 0x14d   : > { %2229 = vmatmul.bf16.vlgmr.msrb.gmra.mxu3 %v4262_v16  ;;  %v1992_v58 = vpop.f32.mrf.mxu2  ;;  %v1980_v63 = vpop.f32.mrf.mxu1 }
 0x14e   : > { %v1993_v59 = vadd.f32 %v1992_v58, %v1979_v57  ;;  %v1981_v0 = vadd.f32 %v1980_v63, %v1966_v62  ;;  %v2299_v62 = vsel %vm2241_vm0, %v4317_v53, 0.0 }
 0x14f   : > { %v2006_v60 = vpop.f32.mrf.mxu3 }
 0x150   : > { %v2007_v61 = vadd.f32 %v2006_v60, %v1993_v59 }
 0x152   : > { %v2236_v27 = vrot.slane %v2007_v61, 7 }
 0x155   : > { %v1994_v1 = vpop.f32.mrf.mxu2 }
 0x156   : > { %v1995_v2 = vadd.f32 %v1994_v1, %v1981_v0 }
 0x157   : > { %v2008_v3 = vpop.f32.mrf.mxu3 }
 0x158   : > { %v2009_v4 = vadd.f32 %v2008_v3, %v1995_v2 }
 0x15a   : > { %v2238_v5 = vrot.slane %v2009_v4, 7 }
 0x15c   : > { %v2243_v16 = vsel %vm2241_vm0, %v2236_v27, %v2238_v5  ;;  %v4336_v6 = vsel %vm2241_vm0, %v2238_v5, %v2236_v27 }
 0x15d   : > { %v4339_v8 = vadd.f32 %v2243_v16, %v4302_v50  ;;  %v2278_v10 = vsel %vm2274_vm1, %v4336_v6, 0.0 }
 0x15e   : > { %v4344_v11 = vadd.f32 %v2278_v10, %v2273_v9 }
 0x163   : > { %v2020_v13 = vpop.f32.mrf.mxu0 }
 0x165   : > { %v2034_v14 = vpop.f32.mrf.mxu1 }
 0x166   : > { %v2035_v28 = vadd.f32 %v2034_v14, %v2020_v13 }
 0x16b   : > { %v2022_v17 = vpop.f32.mrf.mxu0 }
 0x16d   : > { %v2048_v15 = vpop.f32.mrf.mxu2  ;;  %v2036_v18 = vpop.f32.mrf.mxu1 }
 0x16e   : > { %v2037_v30 = vadd.f32 %v2036_v18, %v2022_v17  ;;  %v2049_v35 = vadd.f32 %v2048_v15, %v2035_v28 }
 0x16f   : > { %v2062_v7 = vpop.f32.mrf.mxu3 }
 0x170   : > { %v2063_v39 = vadd.f32 %v2062_v7, %v2049_v35 }
 0x172   : > { %v2246_v46 = vrot.slane %v2063_v39, 6 }
 0x175   : > { %v2050_v19 = vpop.f32.mrf.mxu2 }
 0x176   : > { %v2051_v36 = vadd.f32 %v2050_v19, %v2037_v30 }
 0x177   : > { %v2064_v20 = vpop.f32.mrf.mxu3 }
 0x178   : > { %v2065_v40 = vadd.f32 %v2064_v20, %v2051_v36 }
 0x17a   : > { %v2248_v47 = vrot.slane %v2065_v40, 6 }
 0x17c   : > { %v2253_v52 = vsel %vm2250_vm2, %v2248_v47, %v2246_v46  ;;  %v2251_v12 = vsel %vm2250_vm2, %v2246_v46, %v2248_v47 }
 0x17d   : > { %v2284_v59 = vsel %vm2281_vm3, %v2253_v52, 0.0  ;;  %v2303_v60 = vsel %vm2250_vm2, %v2253_v52, 0.0  ;;  %v2266_v63 = vadd.f32 %v4320_v54, %v2251_v12 }
 0x17e   : > { %v2286_v0 = vadd.f32 %v2284_v59, %v4325_v56  ;;  %v2305_v1 = vadd.f32 %v2303_v60, %v2299_v62 }
 0x183   : > { %v2076_v21 = vpop.f32.mrf.mxu0 }
 0x185   : > { %v2090_v22 = vpop.f32.mrf.mxu1 }
 0x186   : > { %v2091_v54 = vadd.f32 %v2090_v22, %v2076_v21 }
 0x18b   : > { %v2078_v50 = vpop.f32.mrf.mxu0 }
 0x18d   : > { %v2104_v23 = vpop.f32.mrf.mxu2  ;;  %v2092_v25 = vpop.f32.mrf.mxu1 }
 0x18e   : > { %v2093_v56 = vadd.f32 %v2092_v25, %v2078_v50  ;;  %v2105_v10 = vadd.f32 %v2104_v23, %v2091_v54 }
 0x18f   : > { %v2118_v24 = vpop.f32.mrf.mxu3 }
 0x190   : > { %v2119_v15 = vadd.f32 %v2118_v24, %v2105_v10 }
 0x192   : > { %v2247_v28 = vrot.slane %v2119_v15, 6 }
 0x195   : > { %v2106_v26 = vpop.f32.mrf.mxu2 }
 0x196   : > { %v2107_v13 = vadd.f32 %v2106_v26, %v2093_v56 }
 0x197   : > { %v2120_v31 = vpop.f32.mrf.mxu3 }
 0x198   : > { %v2121_v7 = vadd.f32 %v2120_v31, %v2107_v13 }
 0x19a   : > { %v2249_v30 = vrot.slane %v2121_v7, 6 }
 0x19c   : > { %v2254_v21 = vsel %vm2250_vm2, %v2249_v30, %v2247_v28  ;;  %v2252_v23 = vsel %vm2250_vm2, %v2247_v28, %v2249_v30 }
 0x19d   : > { %v2285_v26 = vsel %vm2281_vm3, %v2254_v21, 0.0  ;;  %v2304_v31 = vsel %vm2250_vm2, %v2254_v21, 0.0  ;;  %v2267_v39 = vadd.f32 %v4339_v8, %v2252_v23 }
 0x19e   : > { %v2287_v40 = vadd.f32 %v2285_v26, %v4344_v11 }
 0x1a3   : > { %v2132_v32 = vpop.f32.mrf.mxu0 }
 0x1a5   : > { %v2146_v33 = vpop.f32.mrf.mxu1 }
 0x1a6   : > { %v2147_v37 = vadd.f32 %v2146_v33, %v2132_v32 }
 0x1ab   : > { %v2134_v44 = vpop.f32.mrf.mxu0 }
 0x1ad   : > { %v2160_v38 = vpop.f32.mrf.mxu2  ;;  %v2148_v45 = vpop.f32.mrf.mxu1 }
 0x1ae   : > { %v2161_v42 = vadd.f32 %v2160_v38, %v2147_v37  ;;  %v2149_v48 = vadd.f32 %v2148_v45, %v2134_v44  ;;  %v2300_v38 = vsel %vm2241_vm0, %v4336_v6, 0.0 }
 0x1af   : > { %v2174_v41 = vpop.f32.mrf.mxu3 }
 0x1b0   : > { %v2175_v49 = vadd.f32 %v2174_v41, %v2161_v42  ;;  %v2306_v41 = vadd.f32 %v2304_v31, %v2300_v38 }
 0x1b2   : > { %v2255_v57 = vrot.slane %v2175_v49, 5 }
 0x1b5   : > { %v2162_v51 = vpop.f32.mrf.mxu2 }
 0x1b6   : > { %v2163_v55 = vadd.f32 %v2162_v51, %v2149_v48 }
 0x1b7   : > { %v2176_v43 = vpop.f32.mrf.mxu3 }
 0x1b8   : > { %v2177_v58 = vadd.f32 %v2176_v43, %v2163_v55 }
 0x1ba   : > { %v2257_v61 = vrot.slane %v2177_v58, 5 }
 0x1bc   : > { %v2260_v2 = vsel %vm2259_vm4, %v2255_v57, %v2257_v61  ;;  %v2262_v3 = vsel %vm2259_vm4, %v2257_v61, %v2255_v57 }
 0x1bd   : > { %v2268_v27 = vadd.f32 %v2266_v63, %v2260_v2  ;;  %v2291_v4 = vsel %vm2288_vm5, %v2262_v3, 0.0  ;;  %v2309_v34 = vsel %vm2259_vm4, %v2262_v3, 0.0 }
 0x1be   : > { %v2293_v5 = vadd.f32 %v2291_v4, %v2286_v0  ;;  %v2311_v53 = vadd.f32 %v2309_v34, %v2305_v1 }
 0x1bf   : > { %2270 = vst [vmem:[%s4253_s28 + $0x10] sm:$0xff] %v2268_v27 }
 0x1c0   : > { %2295 = vst [vmem:[%s4253_s28] sm:$0xff] %v2293_v5 }
 0x1c1   : > { %2313 = vst [vmem:[#allocation2] sm:$0xff] %v2311_v53 }
 0x1c4   : > { %v2188_v9 = vpop.f32.mrf.mxu0 }
 0x1c6   : > { %v2202_v16 = vpop.f32.mrf.mxu1 }
 0x1c7   : > { %v2203_v17 = vadd.f32 %v2202_v16, %v2188_v9 }
 0x1cc   : > { %v2190_v19 = vpop.f32.mrf.mxu0 }
 0x1ce   : > { %v2216_v14 = vpop.f32.mrf.mxu2  ;;  %v2204_v20 = vpop.f32.mrf.mxu1 }
 0x1cf   : > { %v2217_v32 = vadd.f32 %v2216_v14, %v2203_v17  ;;  %v2205_v33 = vadd.f32 %v2204_v20, %v2190_v19 }
 0x1d0   : > { %v2230_v18 = vpop.f32.mrf.mxu3 }
 0x1d1   : > { %v2231_v22 = vadd.f32 %v2230_v18, %v2217_v32 }
 0x1d3   : > { %v2256_v36 = vrot.slane %v2231_v22, 5 }
 0x1d6   : > { %v2218_v35 = vpop.f32.mrf.mxu2 }
 0x1d7   : > { %v2219_v50 = vadd.f32 %v2218_v35, %v2205_v33 }
 0x1d8   : > { %v2232_v25 = vpop.f32.mrf.mxu3 }
 0x1d9   : > { %v2233_v24 = vadd.f32 %v2232_v25, %v2219_v50 }
 0x1db   : > { %v2258_v37 = vrot.slane %v2233_v24, 5 }
 0x1dd   : > { %v2261_v42 = vsel %vm2259_vm4, %v2256_v36, %v2258_v37  ;;  %v2263_v44 = vsel %vm2259_vm4, %v2258_v37, %v2256_v36 }
 0x1de   : > { %v2269_v45 = vadd.f32 %v2267_v39, %v2261_v42  ;;  %v2292_v46 = vsel %vm2288_vm5, %v2263_v44, 0.0  ;;  %v2310_v47 = vsel %vm2259_vm4, %v2263_v44, 0.0  ;;  %2321 = sbr.rel (!%p4207_p5) target bundleno = 522 (0x20a), region = 40 }
 0x1df   : > { %v2294_v48 = vadd.f32 %v2292_v46, %v2287_v40  ;;  %v2312_v6 = vadd.f32 %v2310_v47, %v2306_v41 }
 0x1e0   : > { %2271 = vst [vmem:[%s4253_s28 + $0x18] sm:$0xff] %v2269_v45 }
 0x1e1   : > { %2296 = vst [vmem:[%s4253_s28 + $0x8] sm:$0xff] %v2294_v48 }
 0x1e2   : > { %2314 = vst [vmem:[#allocation2 + $0x8] sm:$0xff] %v2312_v6 }
 0x1e3   : > { %s4490_s9 = smov (!%p2324_p1, %s2323_s9), 2 }
 0x1e4   : > { %s3847_s5 = sshll.u32 %s4490_s9, 4 }
 0x1e5   : > { %p3575_p2 = scmp.eq.s32.totalorder %s3847_s5, 0 }
 0x1e6   : > { %s4410_s21 = sshrl.u32 (!%p3575_p2), %s4490_s9, 1 }
 0x1e7   : > { %2336 = sbr.rel (%p3575_p2) target bundleno = 522 (0x20a), region = 44  ;;  %p3576_p3 = scmp.le.s32.totalorder (!%p3575_p2), %s4410_s21, 0 }
 0x1ec   : > { %2452 = sbr.rel (%p3576_p3) target bundleno = 505 (0x1f9), region = 93  ;;  %s4474_s11 = smov (!%p3576_p3), %s4407_s19 }
 0x1ed   : > { %s4475_s12 = smov (!%p3576_p3), %s4253_s28  ;;  %s4419_s7 = smov (!%p3576_p3), 0  }
 0x1ee   : > { %s4121_s20 = smov (!%p3576_p3), 0  }
 0x1f1 LB: >> { %v2349_v29 = vld [vmem:[%s4115_s12] sm:$0xff]  ;;  %v2351_v8 = vld [vmem:[%s4115_s12 + $0x10] sm:$0xff]  ;;  %v2353_v11 = vld [vmem:[%s4115_s12 + $0x8] sm:$0xff]  ;;  %s2357_s22 = sadd.s32 1, %s4119_s7  ;;  %s2343_s20 = sadd.s32 1, %s4123_s20   ;;  %s4123_s20 = sphi %s4121_s20, %s2343_s20   ;;  %s4119_s7 = sphi %s4419_s7, %s4476_s7   ;;  %s4115_s12 = sphi %s4475_s12, %s2362_s12   ;;  %s4111_s11 = sphi %s4474_s11, %s2363_s11  }
 0x1f2   : >> { %2350 = vst [vmem:[%s4111_s11] sm:$0xff] %v2349_v29  ;;  %v2355_v49 = vld [vmem:[%s4115_s12 + $0x18] sm:$0xff]  ;;  %p2358_p4 = scmp.ge.s32.totalorder %s2357_s22, %s4410_s21  ;;  %p2342_p5 = scmp.ge.s32.totalorder %s2343_s20, %s4410_s21 }
 0x1f3   : >> { %2352 = vst [vmem:[%s4111_s11 + $0x10] sm:$0xff] %v2351_v8 }
 0x1f4   : >> { %2354 = vst [vmem:[%s4111_s11 + $0x8] sm:$0xff] %v2353_v11  ;;  %s4492_s22 = smov (%p2358_p4, %s2357_s22), 0  ;;  %2345 = sbr.rel (!%p2342_p5) target bundleno = 497 (0x1f1), region = 99 }
 0x1f5   : >> { %2356 = vst [vmem:[%s4111_s11 + $0x18] sm:$0xff] %v2355_v49  ;;  %s3577_s23 = sshll.u32 %s4492_s22, 5  ;;  %s4476_s7 = smov %s4492_s22 }
 0x1f6   : >> { %s2362_s12 = scalar_lea.vmem %s4253_s28, %s3577_s23 [#allocation5]   ;;  %s2363_s11 = scalar_lea.vmem %s4407_s19, %s3577_s23  }
 0x1f9 PF: > { %s4435_s25 = sand.u32 1, %s4490_s9   ;;  %s3849_s24 = sshll.u32 %s4410_s21, 5 }
 0x1fa   : > { %s4439_s26 = scalar_lea.vmem %s4253_s28, %s3849_s24 [#allocation5]   ;;  %s2370_s27 = scalar_lea.vmem %s4407_s19, %s3849_s24  }
 0x1fb   : > { %p3582_p6 = scmp.le.s32.totalorder %s4435_s25, 0 }
 0x1fc   : > { %s4125_s30 = smov (!%p3582_p6), %s2370_s27   ;;  %s4129_s3 = smov (!%p3582_p6), %s4439_s26  }
 0x1fd   : > { %2466 = sbr.rel (%p3582_p6) target bundleno = 522 (0x20a), region = 104  ;;  %s4133_s4 = smov (!%p3582_p6), 0  }
 0x1fe   : > { %s4137_s5 = smov (!%p3582_p6), 0  }
 0x202 LB: >> { %v2380_v51 = vld [vmem:[%s4131_s3] sm:$0xff]  ;;  %v2382_v52 = vld [vmem:[%s4131_s3 + $0x8] sm:$0xff]  ;;  %s2384_s28 = sadd.s32 1, %s4135_s4  ;;  %s2374_s5 = sadd.s32 1, %s4139_s5   ;;  %s4139_s5 = sphi %s4137_s5, %s2374_s5   ;;  %s4135_s4 = sphi %s4133_s4, %s4134_s4   ;;  %s4131_s3 = sphi %s4129_s3, %s2389_s3   ;;  %s4127_s30 = sphi %s4125_s30, %s2390_s30  }
 0x203   : >> { %2381 = vst [vmem:[%s4127_s30] sm:$0xff] %v2380_v51  ;;  %p2385_p7 = scmp.ge.s32.totalorder %s2384_s28, %s4435_s25  ;;  %p2373_p8 = scmp.ge.s32.totalorder %s2374_s5, %s4435_s25 }
 0x204   : >> { %2383 = vst [vmem:[%s4127_s30 + $0x8] sm:$0xff] %v2382_v52 }
 0x205   : >> { %s4494_s28 = smov (%p2385_p7, %s2384_s28), 0  ;;  %2376 = sbr.rel (!%p2373_p8) target bundleno = 514 (0x202), region = 110 }
 0x206   : >> { %s3583_s9 = sshll.u32 %s4494_s28, 4  ;;  %s4134_s4 = smov %s4494_s28  }
 0x207   : >> { %s2389_s3 = scalar_lea.vmem %s4439_s26, %s3583_s9 [#allocation5]   ;;  %s2390_s30 = scalar_lea.vmem %s2370_s27, %s3583_s9  }
 0x20a PF: > { %s13_s15 = sadd.s32 1, %s4107_s15   ;;  %s4477_s9 = smov %s4087_s10 }
 0x20b   : > { %p10_p9 = scmp.ge.s32.totalorder %s13_s15, 8   ;;  %s4478_s10 = smov %s4230_s29 }
 0x20c   : > { %s4479_s11 = smov %s4099_s13  ;;  %s4480_s12 = smov %s4103_s14 }
 0x20d   : > { %s4481_s13 = smov %s4484_s17  ;;  %s4482_s14 = smov %s4488_s18 }
 0x20e   :  { %12 = sbr.rel (!%p10_p9) target bundleno = 4 (0x4), region = 121 }
 0x213   :  { %2406 = vsyncpa [#allocation4], 1 }
 0x214   :  { %2408 = vsyncpa [#allocation4 + $0x1], 1 }

</bundles_post_ra>
